<compile_context>
chip_gen: v7x
topology: tpu7x:2x2x1
jax: 0.10.0
libtpu: 0.0.40
codegen_flags: <defaults>
</compile_context>

<pallas_src>
import functools

import jax
import jax.numpy as jnp
from jax import lax
from jax.experimental import pallas as pl
from jax.experimental.pallas import tpu as pltpu

BN_EPS = 1e-5


def _round_up(x, m):
    return (x + m - 1) // m * m


# ---------------------------------------------------------------------------
# Kernel
# ---------------------------------------------------------------------------
def _kernel(x_ref,
            w1, b1, w2, b2, w3, b3, fcw, fcb,
            out_ref, *, TB, T):
    """Processes one tile of TB whole batches x T timesteps (channels on lanes)."""
    n = TB * T
    x = x_ref[...].astype(jnp.float32)                       # bf16 staged -> f32 once

    # Time-shift boundary masks, built once per tile; broadcast once per width.
    row = lax.broadcasted_iota(jnp.int32, (n, 1), 0)
    tpos = row % T
    keep_prev_1 = (tpos != 0).astype(jnp.float32)            # zero out t == 0
    keep_next_1 = (tpos != T - 1).astype(jnp.float32)        # zero out t == T-1
    _mask_cache = {}

    def boundary_masks(width):
        if width not in _mask_cache:
            _mask_cache[width] = (jnp.broadcast_to(keep_prev_1, (n, width)),
                                  jnp.broadcast_to(keep_next_1, (n, width)))
        return _mask_cache[width]

    def stage(h, w_ref, b_ref):
        # Conv1d(k=3, pad=1) as three accumulating MXU dots on time-shifted rows.
        # Rolls (+/-1 row) run on the XLU in f32; bf16 only on the dot operands.
        kp, kn = boundary_masks(h.shape[1])
        h_prev = (pltpu.roll(h, shift=1, axis=0) * kp).astype(jnp.bfloat16)
        h_next = (pltpu.roll(h, shift=n - 1, axis=0) * kn).astype(jnp.bfloat16)
        h_curr = h.astype(jnp.bfloat16)
        y = (jnp.dot(h_prev, w_ref[0], preferred_element_type=jnp.float32)
             + jnp.dot(h_curr, w_ref[1], preferred_element_type=jnp.float32)
             + jnp.dot(h_next, w_ref[2], preferred_element_type=jnp.float32)
             + b_ref[...])
        # ReLU. Eval-mode Dropout and the Attention block (softmax over a singleton
        # axis == 1.0) are exact identities and are skipped.
        # TODO(synk): training-mode dropout RNG mask not reproduced (eval semantics).
        return jnp.maximum(y, 0.0)

    h = stage(x, w1, b1)
    h = stage(h, w2, b2)
    h = stage(h, w3, b3)                                     # (n, C3P) f32

    # Global average pool over time per batch.
    c3 = h.shape[1]
    if T % 8 == 0:
        # Sublane-aligned reshape is a free relayout; XLU reduction over time.
        pooled = jnp.sum(h.reshape(TB, T, c3), axis=1) * (1.0 / T)
    else:
        # General T: segmented mean via a one-hot pooling matmul (avoids a
        # non-tile-aligned reshape copy).
        seg = (lax.broadcasted_iota(jnp.int32, (TB, n), 0)
               == lax.broadcasted_iota(jnp.int32, (TB, n), 1) // T)
        pooled = jnp.dot(seg.astype(jnp.bfloat16), h.astype(jnp.bfloat16),
                         preferred_element_type=jnp.float32) * (1.0 / T)

    # Final fully connected layer (ff_layers=1) into a 128-lane-padded output.
    out_ref[...] = (jnp.dot(pooled.astype(jnp.bfloat16), fcw[...],
                            preferred_element_type=jnp.float32) + fcb[...])


# ---------------------------------------------------------------------------
# Wrapper: BN folding, per-tap weights, 128-lane padding, tiling
# ---------------------------------------------------------------------------
def _fold_stage_params(conv_w, conv_b, gamma, beta, mean, var, cin_pad, cout_pad):
    """Fold BN (running stats) into the conv; pad K rows and Cout lanes (bias -> 0)."""
    k, cin, cout = conv_w.shape                               # (3, Cin, Cout)
    scale = gamma * lax.rsqrt(var + BN_EPS)                   # (Cout,)
    w = conv_w * scale[None, None, :]                         # (3, Cin, Cout)
    b = (conv_b - mean) * scale + beta                        # (Cout,)
    # Padded output lanes get zero weights AND zero bias so ReLU keeps them at 0.
    w = jnp.pad(w, ((0, 0), (0, cin_pad - cin), (0, cout_pad - cout)))
    b = jnp.pad(b, (0, cout_pad - cout))
    return w.astype(jnp.bfloat16), b.reshape(1, cout_pad).astype(jnp.float32)


def _prepare_fc(fcw, fcb, kin_pad, ncp):
    kin, nc = fcw.shape
    fcw_p = jnp.pad(fcw, ((0, kin_pad - kin), (0, ncp - nc))).astype(jnp.bfloat16)
    fcb_p = jnp.pad(fcb, (0, ncp - nc)).reshape(1, ncp).astype(jnp.float32)
    return fcw_p, fcb_p


def conv_time_attention_v3(x_ncl, params, *, batch_tile=None):
    """x_ncl: (B, Cin, T) float32 (PyTorch NCL). Returns (B, num_classes) f32."""
    (w1, b1, g1, be1, m1, v1, aw1, ab1,
     w2, b2, g2, be2, m2, v2, aw2, ab2,
     w3, b3, g3, be3, m3, v3, aw3, ab3, fcw, fcb) = params

    # The attention blocks are exact identities only because softmax is taken over a
    # singleton axis (attention Linear out-dim == 1). Guard against config drift.
    for aw in (aw1, aw2, aw3):
        assert aw.shape[1] == 1, "Attention is only an identity for Linear(out=1)."

    B, Cin, T = x_ncl.shape
    num_classes = fcw.shape[1]
    cin_p = _round_up(Cin, 8)              # pad input channels to a sublane multiple
    c1p = _round_up(w1.shape[2], 128)      # stage Couts padded to lane-dense 128
    c2p = _round_up(w2.shape[2], 128)
    c3p = _round_up(w3.shape[2], 128)
    ncp = _round_up(num_classes, 128)      # lane-dense final output

    # Batch tile: whole batches per tile (row shifts never cross tile edges), sized
    # toward ~4K rows/tile while keeping >= 2 grid steps so the "parallel" axis can be
    # sharded across v7x's 2 TensorCores.
    ROW_TARGET = 4096
    if batch_tile is None:
        if B % 8 == 0:
            batch_tile = 8
            while (B % (batch_tile * 2) == 0
                   and (batch_tile * 2) * T <= ROW_TARGET
                   and B // (batch_tile * 2) >= 2):
                batch_tile *= 2
        else:
            batch_tile = B
    TB = batch_tile
    assert B % TB == 0 and (TB % 8 == 0 or TB == B), (B, TB)
    grid = (B // TB,)
    n = TB * T

    # Channels-last slab (B*T, CinP), staged bf16 (halves HBM->VMEM traffic; the MXU
    # consumes bf16 anyway). Fall back to f32 staging if rows aren't bf16-tile aligned.
    x2d = jnp.transpose(x_ncl, (0, 2, 1)).reshape(B * T, Cin)
    x2d = jnp.pad(x2d, ((0, 0), (0, cin_p - Cin)))
    x2d = x2d.astype(jnp.bfloat16 if n % 16 == 0 else jnp.float32)

    wf1, bf1 = _fold_stage_params(w1, b1, g1, be1, m1, v1, cin_p, c1p)
    wf2, bf2 = _fold_stage_params(w2, b2, g2, be2, m2, v2, c1p, c2p)
    wf3, bf3 = _fold_stage_params(w3, b3, g3, be3, m3, v3, c2p, c3p)
    fcw_p, fcb_p = _prepare_fc(fcw, fcb, c3p, ncp)

    operands = (x2d, wf1, bf1, wf2, bf2, wf3, bf3, fcw_p, fcb_p)

    def full_spec(a):
        nd = a.ndim
        return pl.BlockSpec(a.shape, lambda b, _nd=nd: (0,) * _nd)

    in_specs = [pl.BlockSpec((n, cin_p), lambda b: (b, 0))]
    in_specs += [full_spec(a) for a in operands[1:]]

    # VMEM budget: 2x input block + params + 2x output block + live f32 intermediates,
    # with headroom; clamped to 48 MiB so the same tiling also fits v7x's 64 MiB/TC.
    c_max = max(c1p, c2p, c3p)
    est = (2 * n * cin_p * x2d.dtype.itemsize
           + 2 * TB * ncp * 4
           + sum(int(a.size) * a.dtype.itemsize for a in operands[1:])
           + 6 * n * c_max * 4)
    vmem_limit = int(min(max(2 * est, 32 * 1024 * 1024), 48 * 1024 * 1024))

    out_padded = pl.pallas_call(
        functools.partial(_kernel, TB=TB, T=T),
        out_shape=jax.ShapeDtypeStruct((B, ncp), jnp.float32),
        grid=grid,
        in_specs=in_specs,
        out_specs=pl.BlockSpec((TB, ncp), lambda b: (b, 0)),
        compiler_params=pltpu.CompilerParams(
            dimension_semantics=("parallel",),
            vmem_limit_bytes=vmem_limit),
    )(*operands)
    return out_padded[:, :num_classes]


# ---------------------------------------------------------------------------
# Synthetic params + pure-JAX reference (mirrors the PyTorch module, eval mode)
# ---------------------------------------------------------------------------
def init_params(key, num_channels, num_classes, expansion=1):
    keys = iter(jax.random.split(key, 32))

    def nrm(shape, scale=0.1):
        return (scale * jax.random.normal(next(keys), shape)).astype(jnp.float32)

    params = []
    cin = num_channels
    for cout in (32 * expansion, 64 * expansion, 128 * expansion):
        params += [
            nrm((3, cin, cout)),             # conv weight, stored (k, Cin, Cout)
            nrm((cout,)),                    # conv bias
            1.0 + nrm((cout,)),              # bn gamma
            nrm((cout,)),                    # bn beta
            nrm((cout,)),                    # bn running_mean
            1.0 + jnp.abs(nrm((cout,))),     # bn running_var (> 0)
            nrm((cout, 1)),                  # attention linear weight (identity in effect)
            nrm((1,)),                       # attention linear bias
        ]
        cin = cout
    params += [
        nrm((128 * expansion, num_classes)),  # fc weight, stored (in, out)
        nrm((num_classes,)),                  # fc bias
    ]
    return tuple(params)


def reference(x_ncl, params):
    (w1, b1, g1, be1, m1, v1, aw1, ab1,
     w2, b2, g2, be2, m2, v2, aw2, ab2,
     w3, b3, g3, be3, m3, v3, aw3, ab3, fcw, fcb) = params

    def stage(x, w, b, g, be, m, v, aw, ab):
        _, _, T_ = x.shape
        xp = jnp.pad(x, ((0, 0), (0, 0), (1, 1)))
        y = sum(jnp.einsum('bct,co->bot', xp[:, :, k:k + T_], w[k]) for k in range(3))
        y = y + b[None, :, None]
        y = (y - m[None, :, None]) * g[None, :, None] / jnp.sqrt(v[None, :, None] + BN_EPS) \
            + be[None, :, None]
        y = jnp.maximum(y, 0.0)                       # Dropout: eval-mode identity
        xt = jnp.transpose(y, (0, 2, 1))              # Attention (tr=True)
        wts = jax.nn.softmax(xt @ aw + ab, axis=2)    # (B, T, 1): softmax over singleton
        wts = jnp.transpose(wts, (0, 2, 1))           # (B, 1, T)
        wts = jnp.repeat(wts, y.shape[1], axis=1)     # (B, C, T)
        return wts * y

    h = stage(x_ncl, w1, b1, g1, be1, m1, v1, aw1, ab1)
    h = stage(h, w2, b2, g2, be2, m2, v2, aw2, ab2)
    h = stage(h, w3, b3, g3, be3, m3, v3, aw3, ab3)
    pooled = jnp.mean(h, axis=2)                      # avg_pool1d over full length
    return pooled @ fcw + fcb[None, :]


if __name__ == "__main__":
    key = jax.random.PRNGKey(0)
    kx, kp = jax.random.split(key)
    B, Cin, T, NUM_CLASSES = 16, 4, 16, 8

    x = jax.random.normal(kx, (B, Cin, T), dtype=jnp.float32)
    params = init_params(kp, Cin, NUM_CLASSES, expansion=1)

    # batch_tile=8 -> 2-step grid over batch tiles (exercises tiling + the parallel axis).
    out = jax.block_until_ready(conv_time_attention_v3(x, params, batch_tile=8))
    ref = reference(x, params)

    assert out.shape == (B, NUM_CLASSES), out.shape
    err = float(jnp.max(jnp.abs(out - ref)))
    assert jnp.allclose(out, ref, atol=2e-2, rtol=2e-2), err
    print("KERNEL_OK")
</pallas_src>

<mosaic_0001>
module attributes {stable_mosaic.version = 11 : i64} {
  func.func @_kernel(%arg0: i32, %arg1: memref<128x8xbf16, #tpu.memory_space<vmem>>, %arg2: memref<3x8x128xbf16, #tpu.memory_space<vmem>>, %arg3: memref<1x128xf32, #tpu.memory_space<vmem>>, %arg4: memref<3x128x128xbf16, #tpu.memory_space<vmem>>, %arg5: memref<1x128xf32, #tpu.memory_space<vmem>>, %arg6: memref<3x128x128xbf16, #tpu.memory_space<vmem>>, %arg7: memref<1x128xf32, #tpu.memory_space<vmem>>, %arg8: memref<128x128xbf16, #tpu.memory_space<vmem>>, %arg9: memref<1x128xf32, #tpu.memory_space<vmem>>, %arg10: memref<8x128xf32, #tpu.memory_space<vmem>>) attributes {dimension_semantics = [#tpu.dimension_semantics<parallel>], iteration_bounds = array<i64: 2>, scalar_prefetch = 0 : i64, scratch_operands = 0 : i64, tpu.core_type = #tpu.core_type<tc>, window_params = [{transform_indices = @transform_0, window_bounds = array<i64: 128, 8>}, {pipeline_mode = #tpu.pipeline_mode<synchronous>, transform_indices = @transform_1, window_bounds = array<i64: 3, 8, 128>}, {pipeline_mode = #tpu.pipeline_mode<synchronous>, transform_indices = @transform_2, window_bounds = array<i64: 1, 128>}, {pipeline_mode = #tpu.pipeline_mode<synchronous>, transform_indices = @transform_3, window_bounds = array<i64: 3, 128, 128>}, {pipeline_mode = #tpu.pipeline_mode<synchronous>, transform_indices = @transform_4, window_bounds = array<i64: 1, 128>}, {pipeline_mode = #tpu.pipeline_mode<synchronous>, transform_indices = @transform_5, window_bounds = array<i64: 3, 128, 128>}, {pipeline_mode = #tpu.pipeline_mode<synchronous>, transform_indices = @transform_6, window_bounds = array<i64: 1, 128>}, {pipeline_mode = #tpu.pipeline_mode<synchronous>, transform_indices = @transform_7, window_bounds = array<i64: 128, 128>}, {pipeline_mode = #tpu.pipeline_mode<synchronous>, transform_indices = @transform_8, window_bounds = array<i64: 1, 128>}, {transform_indices = @transform_9, window_bounds = array<i64: 8, 128>}]} {
    %c0 = arith.constant 0 : index
    %c0_0 = arith.constant 0 : index
    %0 = vector.load %arg1[%c0, %c0_0] : memref<128x8xbf16, #tpu.memory_space<vmem>>, vector<128x8xbf16>
    %1 = arith.extf %0 : vector<128x8xbf16> to vector<128x8xf32>
    %2 = tpu.iota {dimensions = array<i32: 0>} : vector<128x1xi32>
    %c16_i32 = arith.constant 16 : i32
    %c0_i32 = arith.constant 0 : i32
    %3 = arith.cmpi eq, %c16_i32, %c0_i32 : i32
    %c1_i32 = arith.constant 1 : i32
    %4 = arith.select %3, %c1_i32, %c16_i32 : i32
    %5 = vector.broadcast %4 : i32 to vector<128x1xi32>
    %6 = arith.remsi %2, %5 : vector<128x1xi32>
    %c0_i32_1 = arith.constant 0 : i32
    %7 = vector.broadcast %c0_i32_1 : i32 to vector<128x1xi32>
    %8 = arith.cmpi ne, %6, %7 : vector<128x1xi32>
    %c0_i32_2 = arith.constant 0 : i32
    %9 = vector.broadcast %c0_i32_2 : i32 to vector<128x1xi32>
    %10 = arith.cmpi slt, %6, %9 : vector<128x1xi32>
    %c0_i32_3 = arith.constant 0 : i32
    %11 = arith.cmpi slt, %4, %c0_i32_3 : i32
    %12 = vector.broadcast %11 : i1 to vector<128x1xi1>
    %13 = vector.broadcast %12 : vector<128x1xi1> to vector<128x1xi1>
    %14 = arith.xori %10, %13 : vector<128x1xi1>
    %15 = arith.andi %14, %8 : vector<128x1xi1>
    %16 = vector.broadcast %4 : i32 to vector<128x1xi32>
    %17 = arith.addi %6, %16 : vector<128x1xi32>
    %18 = arith.select %15, %17, %6 : vector<128x1xi1>, vector<128x1xi32>
    %c0_i32_4 = arith.constant 0 : i32
    %19 = vector.broadcast %c0_i32_4 : i32 to vector<128x1xi32>
    %20 = arith.cmpi ne, %18, %19 : vector<128x1xi32>
    %21 = arith.extui %20 : vector<128x1xi1> to vector<128x1xi32>
    %22 = arith.sitofp %21 : vector<128x1xi32> to vector<128x1xf32>
    %c15_i32 = arith.constant 15 : i32
    %23 = vector.broadcast %c15_i32 : i32 to vector<128x1xi32>
    %24 = arith.cmpi ne, %18, %23 : vector<128x1xi32>
    %25 = arith.extui %24 : vector<128x1xi1> to vector<128x1xi32>
    %26 = arith.sitofp %25 : vector<128x1xi32> to vector<128x1xf32>
    %27 = vector.shape_cast %22 : vector<128x1xf32> to vector<128x1xf32>
    %28 = vector.broadcast %27 : vector<128x1xf32> to vector<128x8xf32>
    %29 = vector.shape_cast %26 : vector<128x1xf32> to vector<128x1xf32>
    %30 = vector.broadcast %29 : vector<128x1xf32> to vector<128x8xf32>
    %c1_i32_5 = arith.constant 1 : i32
    %31 = tpu.dynamic_rotate %1 by %c1_i32_5 dim 0 : vector<128x8xf32>, i32 -> vector<128x8xf32>
    %32 = arith.mulf %31, %28 : vector<128x8xf32>
    %33 = arith.truncf %32 : vector<128x8xf32> to vector<128x8xbf16>
    %c127_i32 = arith.constant 127 : i32
    %34 = tpu.dynamic_rotate %1 by %c127_i32 dim 0 : vector<128x8xf32>, i32 -> vector<128x8xf32>
    %35 = arith.mulf %34, %30 : vector<128x8xf32>
    %36 = arith.truncf %35 : vector<128x8xf32> to vector<128x8xbf16>
    %37 = arith.truncf %1 : vector<128x8xf32> to vector<128x8xbf16>
    %c0_6 = arith.constant 0 : index
    %c0_7 = arith.constant 0 : index
    %c0_8 = arith.constant 0 : index
    %38 = vector.load %arg2[%c0_6, %c0_7, %c0_8] : memref<3x8x128xbf16, #tpu.memory_space<vmem>>, vector<1x8x128xbf16>
    %39 = vector.shape_cast %38 : vector<1x8x128xbf16> to vector<8x128xbf16>
    %cst = arith.constant dense<0.000000e+00> : vector<128x128xf32>
    %40 = tpu.matmul %33, %39, %cst {dimension_numbers = #tpu.dot_dimension_numbers<[1], [0], [0], [1], [0, 0, 1, 1], [], []>} : vector<128x8xbf16>, vector<8x128xbf16>, vector<128x128xf32> -> vector<128x128xf32>
    %c1 = arith.constant 1 : index
    %c0_9 = arith.constant 0 : index
    %c0_10 = arith.constant 0 : index
    %41 = vector.load %arg2[%c1, %c0_9, %c0_10] : memref<3x8x128xbf16, #tpu.memory_space<vmem>>, vector<1x8x128xbf16>
    %42 = vector.shape_cast %41 : vector<1x8x128xbf16> to vector<8x128xbf16>
    %cst_11 = arith.constant dense<0.000000e+00> : vector<128x128xf32>
    %43 = tpu.matmul %37, %42, %cst_11 {dimension_numbers = #tpu.dot_dimension_numbers<[1], [0], [0], [1], [0, 0, 1, 1], [], []>} : vector<128x8xbf16>, vector<8x128xbf16>, vector<128x128xf32> -> vector<128x128xf32>
    %44 = arith.addf %40, %43 : vector<128x128xf32>
    %c2 = arith.constant 2 : index
    %c0_12 = arith.constant 0 : index
    %c0_13 = arith.constant 0 : index
    %45 = vector.load %arg2[%c2, %c0_12, %c0_13] : memref<3x8x128xbf16, #tpu.memory_space<vmem>>, vector<1x8x128xbf16>
    %46 = vector.shape_cast %45 : vector<1x8x128xbf16> to vector<8x128xbf16>
    %cst_14 = arith.constant dense<0.000000e+00> : vector<128x128xf32>
    %47 = tpu.matmul %36, %46, %cst_14 {dimension_numbers = #tpu.dot_dimension_numbers<[1], [0], [0], [1], [0, 0, 1, 1], [], []>} : vector<128x8xbf16>, vector<8x128xbf16>, vector<128x128xf32> -> vector<128x128xf32>
    %48 = arith.addf %44, %47 : vector<128x128xf32>
    %c0_15 = arith.constant 0 : index
    %c0_16 = arith.constant 0 : index
    %49 = vector.load %arg3[%c0_15, %c0_16] : memref<1x128xf32, #tpu.memory_space<vmem>>, vector<1x128xf32>
    %50 = vector.broadcast %49 : vector<1x128xf32> to vector<128x128xf32>
    %51 = arith.addf %48, %50 : vector<128x128xf32>
    %cst_17 = arith.constant 0.000000e+00 : f32
    %52 = vector.broadcast %cst_17 : f32 to vector<128x128xf32>
    %53 = arith.maximumf %51, %52 : vector<128x128xf32>
    %54 = vector.shape_cast %22 : vector<128x1xf32> to vector<128x1xf32>
    %55 = vector.broadcast %54 : vector<128x1xf32> to vector<128x128xf32>
    %56 = vector.shape_cast %26 : vector<128x1xf32> to vector<128x1xf32>
    %57 = vector.broadcast %56 : vector<128x1xf32> to vector<128x128xf32>
    %c1_i32_18 = arith.constant 1 : i32
    %58 = tpu.dynamic_rotate %53 by %c1_i32_18 dim 0 : vector<128x128xf32>, i32 -> vector<128x128xf32>
    %59 = arith.mulf %58, %55 : vector<128x128xf32>
    %60 = arith.truncf %59 : vector<128x128xf32> to vector<128x128xbf16>
    %c127_i32_19 = arith.constant 127 : i32
    %61 = tpu.dynamic_rotate %53 by %c127_i32_19 dim 0 : vector<128x128xf32>, i32 -> vector<128x128xf32>
    %62 = arith.mulf %61, %57 : vector<128x128xf32>
    %63 = arith.truncf %62 : vector<128x128xf32> to vector<128x128xbf16>
    %64 = arith.truncf %53 : vector<128x128xf32> to vector<128x128xbf16>
    %c0_20 = arith.constant 0 : index
    %c0_21 = arith.constant 0 : index
    %c0_22 = arith.constant 0 : index
    %65 = vector.load %arg4[%c0_20, %c0_21, %c0_22] : memref<3x128x128xbf16, #tpu.memory_space<vmem>>, vector<1x128x128xbf16>
    %66 = vector.shape_cast %65 : vector<1x128x128xbf16> to vector<128x128xbf16>
    %cst_23 = arith.constant dense<0.000000e+00> : vector<128x128xf32>
    %67 = tpu.matmul %60, %66, %cst_23 {dimension_numbers = #tpu.dot_dimension_numbers<[1], [0], [0], [1], [0, 0, 1, 1], [], []>} : vector<128x128xbf16>, vector<128x128xbf16>, vector<128x128xf32> -> vector<128x128xf32>
    %c1_24 = arith.constant 1 : index
    %c0_25 = arith.constant 0 : index
    %c0_26 = arith.constant 0 : index
    %68 = vector.load %arg4[%c1_24, %c0_25, %c0_26] : memref<3x128x128xbf16, #tpu.memory_space<vmem>>, vector<1x128x128xbf16>
    %69 = vector.shape_cast %68 : vector<1x128x128xbf16> to vector<128x128xbf16>
    %cst_27 = arith.constant dense<0.000000e+00> : vector<128x128xf32>
    %70 = tpu.matmul %64, %69, %cst_27 {dimension_numbers = #tpu.dot_dimension_numbers<[1], [0], [0], [1], [0, 0, 1, 1], [], []>} : vector<128x128xbf16>, vector<128x128xbf16>, vector<128x128xf32> -> vector<128x128xf32>
    %71 = arith.addf %67, %70 : vector<128x128xf32>
    %c2_28 = arith.constant 2 : index
    %c0_29 = arith.constant 0 : index
    %c0_30 = arith.constant 0 : index
    %72 = vector.load %arg4[%c2_28, %c0_29, %c0_30] : memref<3x128x128xbf16, #tpu.memory_space<vmem>>, vector<1x128x128xbf16>
    %73 = vector.shape_cast %72 : vector<1x128x128xbf16> to vector<128x128xbf16>
    %cst_31 = arith.constant dense<0.000000e+00> : vector<128x128xf32>
    %74 = tpu.matmul %63, %73, %cst_31 {dimension_numbers = #tpu.dot_dimension_numbers<[1], [0], [0], [1], [0, 0, 1, 1], [], []>} : vector<128x128xbf16>, vector<128x128xbf16>, vector<128x128xf32> -> vector<128x128xf32>
    %75 = arith.addf %71, %74 : vector<128x128xf32>
    %c0_32 = arith.constant 0 : index
    %c0_33 = arith.constant 0 : index
    %76 = vector.load %arg5[%c0_32, %c0_33] : memref<1x128xf32, #tpu.memory_space<vmem>>, vector<1x128xf32>
    %77 = vector.broadcast %76 : vector<1x128xf32> to vector<128x128xf32>
    %78 = arith.addf %75, %77 : vector<128x128xf32>
    %cst_34 = arith.constant 0.000000e+00 : f32
    %79 = vector.broadcast %cst_34 : f32 to vector<128x128xf32>
    %80 = arith.maximumf %78, %79 : vector<128x128xf32>
    %c1_i32_35 = arith.constant 1 : i32
    %81 = tpu.dynamic_rotate %80 by %c1_i32_35 dim 0 : vector<128x128xf32>, i32 -> vector<128x128xf32>
    %82 = arith.mulf %81, %55 : vector<128x128xf32>
    %83 = arith.truncf %82 : vector<128x128xf32> to vector<128x128xbf16>
    %c127_i32_36 = arith.constant 127 : i32
    %84 = tpu.dynamic_rotate %80 by %c127_i32_36 dim 0 : vector<128x128xf32>, i32 -> vector<128x128xf32>
    %85 = arith.mulf %84, %57 : vector<128x128xf32>
    %86 = arith.truncf %85 : vector<128x128xf32> to vector<128x128xbf16>
    %87 = arith.truncf %80 : vector<128x128xf32> to vector<128x128xbf16>
    %c0_37 = arith.constant 0 : index
    %c0_38 = arith.constant 0 : index
    %c0_39 = arith.constant 0 : index
    %88 = vector.load %arg6[%c0_37, %c0_38, %c0_39] : memref<3x128x128xbf16, #tpu.memory_space<vmem>>, vector<1x128x128xbf16>
    %89 = vector.shape_cast %88 : vector<1x128x128xbf16> to vector<128x128xbf16>
    %cst_40 = arith.constant dense<0.000000e+00> : vector<128x128xf32>
    %90 = tpu.matmul %83, %89, %cst_40 {dimension_numbers = #tpu.dot_dimension_numbers<[1], [0], [0], [1], [0, 0, 1, 1], [], []>} : vector<128x128xbf16>, vector<128x128xbf16>, vector<128x128xf32> -> vector<128x128xf32>
    %c1_41 = arith.constant 1 : index
    %c0_42 = arith.constant 0 : index
    %c0_43 = arith.constant 0 : index
    %91 = vector.load %arg6[%c1_41, %c0_42, %c0_43] : memref<3x128x128xbf16, #tpu.memory_space<vmem>>, vector<1x128x128xbf16>
    %92 = vector.shape_cast %91 : vector<1x128x128xbf16> to vector<128x128xbf16>
    %cst_44 = arith.constant dense<0.000000e+00> : vector<128x128xf32>
    %93 = tpu.matmul %87, %92, %cst_44 {dimension_numbers = #tpu.dot_dimension_numbers<[1], [0], [0], [1], [0, 0, 1, 1], [], []>} : vector<128x128xbf16>, vector<128x128xbf16>, vector<128x128xf32> -> vector<128x128xf32>
    %94 = arith.addf %90, %93 : vector<128x128xf32>
    %c2_45 = arith.constant 2 : index
    %c0_46 = arith.constant 0 : index
    %c0_47 = arith.constant 0 : index
    %95 = vector.load %arg6[%c2_45, %c0_46, %c0_47] : memref<3x128x128xbf16, #tpu.memory_space<vmem>>, vector<1x128x128xbf16>
    %96 = vector.shape_cast %95 : vector<1x128x128xbf16> to vector<128x128xbf16>
    %cst_48 = arith.constant dense<0.000000e+00> : vector<128x128xf32>
    %97 = tpu.matmul %86, %96, %cst_48 {dimension_numbers = #tpu.dot_dimension_numbers<[1], [0], [0], [1], [0, 0, 1, 1], [], []>} : vector<128x128xbf16>, vector<128x128xbf16>, vector<128x128xf32> -> vector<128x128xf32>
    %98 = arith.addf %94, %97 : vector<128x128xf32>
    %c0_49 = arith.constant 0 : index
    %c0_50 = arith.constant 0 : index
    %99 = vector.load %arg7[%c0_49, %c0_50] : memref<1x128xf32, #tpu.memory_space<vmem>>, vector<1x128xf32>
    %100 = vector.broadcast %99 : vector<1x128xf32> to vector<128x128xf32>
    %101 = arith.addf %98, %100 : vector<128x128xf32>
    %cst_51 = arith.constant 0.000000e+00 : f32
    %102 = vector.broadcast %cst_51 : f32 to vector<128x128xf32>
    %103 = arith.maximumf %101, %102 : vector<128x128xf32>
    %104 = vector.shape_cast %103 : vector<128x128xf32> to vector<8x16x128xf32>
    %cst_52 = arith.constant dense<0.000000e+00> : vector<8x128xf32>
    %105 = vector.multi_reduction <add>, %104, %cst_52 [1] : vector<8x16x128xf32> to vector<8x128xf32>
    %cst_53 = arith.constant 6.250000e-02 : f32
    %106 = vector.broadcast %cst_53 : f32 to vector<8x128xf32>
    %107 = arith.mulf %105, %106 : vector<8x128xf32>
    %108 = arith.truncf %107 : vector<8x128xf32> to vector<8x128xbf16>
    %c0_54 = arith.constant 0 : index
    %c0_55 = arith.constant 0 : index
    %109 = vector.load %arg8[%c0_54, %c0_55] : memref<128x128xbf16, #tpu.memory_space<vmem>>, vector<128x128xbf16>
    %cst_56 = arith.constant dense<0.000000e+00> : vector<8x128xf32>
    %110 = tpu.matmul %108, %109, %cst_56 {dimension_numbers = #tpu.dot_dimension_numbers<[1], [0], [0], [1], [0, 0, 1, 1], [], []>} : vector<8x128xbf16>, vector<128x128xbf16>, vector<8x128xf32> -> vector<8x128xf32>
    %c0_57 = arith.constant 0 : index
    %c0_58 = arith.constant 0 : index
    %111 = vector.load %arg9[%c0_57, %c0_58] : memref<1x128xf32, #tpu.memory_space<vmem>>, vector<1x128xf32>
    %112 = vector.broadcast %111 : vector<1x128xf32> to vector<8x128xf32>
    %113 = arith.addf %110, %112 : vector<8x128xf32>
    %c0_59 = arith.constant 0 : index
    %c0_60 = arith.constant 0 : index
    %114 = vector.load %arg10[%c0_59, %c0_60] : memref<8x128xf32, #tpu.memory_space<vmem>>, vector<8x128xf32>
    tpu.vector_store %arg10[%c0_59, %c0_60], %113 {strides = array<i32>} : memref<8x128xf32, #tpu.memory_space<vmem>>, vector<8x128xf32>,
    return
  }
  func.func @transform_0(%arg0: i32) -> (i32, i32) {
    %c0_i32 = arith.constant 0 : i32
    %c0_i32_0 = arith.constant 0 : i32
    return %arg0, %c0_i32 : i32, i32
  }
  func.func @transform_1(%arg0: i32) -> (i32, i32, i32) {
    %c0_i32 = arith.constant 0 : i32
    %c0_i32_0 = arith.constant 0 : i32
    %c0_i32_1 = arith.constant 0 : i32
    %c0_i32_2 = arith.constant 0 : i32
    return %c0_i32, %c0_i32_0, %c0_i32_1 : i32, i32, i32
  }
  func.func @transform_2(%arg0: i32) -> (i32, i32) {
    %c0_i32 = arith.constant 0 : i32
    %c0_i32_0 = arith.constant 0 : i32
    %c0_i32_1 = arith.constant 0 : i32
    return %c0_i32, %c0_i32_0 : i32, i32
  }
  func.func @transform_3(%arg0: i32) -> (i32, i32, i32) {
    %c0_i32 = arith.constant 0 : i32
    %c0_i32_0 = arith.constant 0 : i32
    %c0_i32_1 = arith.constant 0 : i32
    %c0_i32_2 = arith.constant 0 : i32
    return %c0_i32, %c0_i32_0, %c0_i32_1 : i32, i32, i32
  }
  func.func @transform_4(%arg0: i32) -> (i32, i32) {
    %c0_i32 = arith.constant 0 : i32
    %c0_i32_0 = arith.constant 0 : i32
    %c0_i32_1 = arith.constant 0 : i32
    return %c0_i32, %c0_i32_0 : i32, i32
  }
  func.func @transform_5(%arg0: i32) -> (i32, i32, i32) {
    %c0_i32 = arith.constant 0 : i32
    %c0_i32_0 = arith.constant 0 : i32
    %c0_i32_1 = arith.constant 0 : i32
    %c0_i32_2 = arith.constant 0 : i32
    return %c0_i32, %c0_i32_0, %c0_i32_1 : i32, i32, i32
  }
  func.func @transform_6(%arg0: i32) -> (i32, i32) {
    %c0_i32 = arith.constant 0 : i32
    %c0_i32_0 = arith.constant 0 : i32
    %c0_i32_1 = arith.constant 0 : i32
    return %c0_i32, %c0_i32_0 : i32, i32
  }
  func.func @transform_7(%arg0: i32) -> (i32, i32) {
    %c0_i32 = arith.constant 0 : i32
    %c0_i32_0 = arith.constant 0 : i32
    %c0_i32_1 = arith.constant 0 : i32
    return %c0_i32, %c0_i32_0 : i32, i32
  }
  func.func @transform_8(%arg0: i32) -> (i32, i32) {
    %c0_i32 = arith.constant 0 : i32
    %c0_i32_0 = arith.constant 0 : i32
    %c0_i32_1 = arith.constant 0 : i32
    return %c0_i32, %c0_i32_0 : i32, i32
  }
  func.func @transform_9(%arg0: i32) -> (i32, i32) {
    %c0_i32 = arith.constant 0 : i32
    %c0_i32_0 = arith.constant 0 : i32
    return %arg0, %c0_i32 : i32, i32
  }
}

</mosaic_0001>

<bundles_post_ra>
// kernel: tpu_custom_call.1
= control target key start
LH: loop header
LB: loop body
LE: loop exit
PB: predicated region body
PF: predicated region fallthrough
CT: control target
= control target key end

     0   :  { %14 = vsyncpa [#allocation3], 0  ;;  %s4955_s0 = inlined_call_operand.vmem [shape: bf16[256,8], index: 0, kind: input, shape index: {}]   ;;  %s4956_s1 = inlined_call_operand.vmem [shape: bf16[3,8,128], index: 1, kind: input, shape index: {}]   ;;  %s4957_s2 = inlined_call_operand.vmem [shape: f32[1,128], index: 2, kind: input, shape index: {}]   ;;  %s4958_s3 = inlined_call_operand.hbm [shape: bf16[3,128,128], index: 3, kind: input, shape index: {}]   ;;  %s4959_s4 = inlined_call_operand.vmem [shape: f32[1,128], index: 4, kind: input, shape index: {}]   ;;  %s4960_s5 = inlined_call_operand.hbm [shape: bf16[3,128,128], index: 5, kind: input, shape index: {}]   ;;  %s4961_s6 = inlined_call_operand.vmem [shape: f32[1,128], index: 6, kind: input, shape index: {}]   ;;  %s4962_s7 = inlined_call_operand.vmem [shape: bf16[128,128], index: 7, kind: input, shape index: {}]   ;;  %s4963_s8 = inlined_call_operand.vmem [shape: f32[1,128], index: 8, kind: input, shape index: {}]   ;;  %s4964_s9 = inlined_call_operand.hbm [shape: f32[16,128], index: 9, kind: output, shape index: {}]  }
   0x1   :  { %15 = vsyncpa [#allocation6], 0 }
   0x2   :  { %16 = vsyncpa [#allocation4], 0 }
   0x3   :  { %18 = vsyncpa [#allocation4 + $0x1], 0  ;;  %s3863_s30 = smov 0   ;;  %s3865_s10 = smov 0  }
   0x4   :  { %s3867_s11 = smov 0   ;;  %s3869_s12 = smov 0  }
   0x5 LB: > { %4974 = sst [smem:[#allocation11_spill]] %s3800_s11  ;;  %s3884_s13 = sadd.s32 4294967295, %s3804_s12   ;;  %s3804_s12 = sphi %s3869_s12, %s5008_s12   ;;  %s3800_s11 = sphi %s3867_s11, %s5010_s11   ;;  %s3796_s10 = sphi %s3865_s10, %s5012_s10   ;;  %s3792_s30 = sphi %s3863_s30, %s5011_s30  }
   0x6   : > { %s2920_s14 = sadd.s32 4294967294, %s3804_s12   ;;  %s3888_s15 = sadd.s32 1, %s3804_s12  }
   0x7   : > { %4975 = sst [smem:[#allocation12_spill]] %s3888_s15  ;;  %s225_s16 = sadd.s32 1, %s3800_s11 }
   0x8   : > { %s222_s17 = ssub.s32 %s3804_s12, %s3888_s15  ;;  %p235_p0 = scmp.ne.s32.totalorder %s3800_s11, %s3796_s10 }
   0x9   : > { %p223_p1 = scmp.eq.s32.totalorder %s222_s17, 0  ;;  %p236_p2 = scmp.eq.s32.totalorder %s3884_s13, 1 }
   0xa   : > { %p241_p3 = scmp.ne.s32.totalorder %s3796_s10, %s3792_s30  ;;  %p242_p4 = scmp.eq.s32.totalorder %s2920_s14, 1 }
   0xb   : > { %s3899_s18 = scalar_select %p223_p1, %s3800_s11, %s225_s16  }
   0xc   : > { %p3901_p5 = por %p236_p2, %p235_p0  ;;  %p3905_p6 = por %p242_p4, %p241_p3 }
   0xd   : > { %4976 = sst [smem:[#allocation13_spill]] %s3899_s18  ;;  %p2921_p7 = scmp.ge.s32.totalorder %s3804_s12, 1 }
   0xe   : > { %s4977_s19 = scalar_select %p3901_p5, 1, 0 }
   0xf   : > { %s4978_s20 = scalar_select %p3905_p6, 1, 0 }
  0x10   : > { %p249_p8 = scmp.lt.s32.totalorder %s3804_s12, 3  ;;  %p4965_p9 = scmp.eq.s32.totalorder %s3884_s13, 0 }
  0x11   : > { %s3806_s22 = smov [#allocation2]   ;;  %s3807_s25 = smov [#allocation5]  }
  0x12   : > { %p3912_p10 = pnand %p2921_p7, %p249_p8  ;;  %s267_s23 = sshll.u32 %s3806_s22, 4  ;;  %s268_s23 = int_to_ptr.vmem [resolvable:$true] %s267_s23 }
  0x13   : > { %s283_s26 = sshll.u32 %s3807_s25, 4  ;;  %s3678_s29 = scalar_lea.hbm %s4958_s3, 3072  ;;  %s3924_s26 = int_to_ptr.vmem [resolvable:$true] %s283_s26 }
  0x14   : > { %s4979_s21 = scalar_select %p3912_p10, 1, 0 }
  0x15   : > { %p3552_p11 = pneg %p3912_p10  ;;  %p3679_p13 = scmp.ne.s32.totalorder %s4958_s3, %s3678_s29 }
  0x16   : > { %p3685_p3 = scmp.lt.u32.totalorder %s3678_s29, %s4958_s3 }
  0x17   : > { %p3920_p12 = pnand %p4965_p9, %p3552_p11 }
  0x19   : > { %p3680_p0 = pneg %p3920_p12 }
  0x1b   : > { %p3681_p1 = pnand %p3680_p0, %p3679_p13 }
  0x1d   : > { %p3682_p2 = pneg %p3681_p1 }
  0x1f   : > { %p3687_p4 = pnand %p3685_p3, %p3682_p2 }
  0x21   : > { %3690 = shalt.err (!%p3687_p4)
}
  0x22   : > { %s3691_s25 = scalar_lea.vmem %s268_s23, 3072  ;;  %p3699_p9 = scmp.lt.s32.totalorder %s268_s23, %s268_s23 }
  0x23   : > { %p3692_p7 = scmp.ne.s32.totalorder %s268_s23, %s3691_s25  ;;  %p3700_p6 = scmp.lt.s32.totalorder %s3691_s25, %s3691_s25 }
  0x25   : > { %p3694_p8 = pnand %p3692_p7, %p3680_p0  ;;  %p3701_p5 = por %p3700_p6, %p3699_p9 }
  0x27   : > { %p3695_p11 = pneg %p3694_p8 }
  0x29   : > { %p3702_p10 = pnand %p3701_p5, %p3695_p11 }
  0x2b   : > { %3705 = shalt.err (!%p3702_p10)
}
  0x2c   : > { %s3808_s27 = smov 64   ;;  %s3809_s28 = smov 4  }
  0x2d   : > { %3555 = dma.hbm_to_vmem [thread:$0]  (!%p3920_p12), %s4958_s3, 3072, %s268_s23, [#allocation3], %s3808_s27, %s3808_s27, %s3809_s28  }
  0x2e   : > { %s3706_s22 = scalar_lea.hbm %s4960_s5, 3072 }
  0x2f   : > { %p3707_p13 = scmp.ne.s32.totalorder %s4960_s5, %s3706_s22  ;;  %p3713_p9 = scmp.lt.u32.totalorder %s3706_s22, %s4960_s5 }
  0x31   : > { %p3709_p5 = pnand %p3707_p13, %p3680_p0 }
  0x33   : > { %p3710_p6 = pneg %p3709_p5 }
  0x35   : > { %p3715_p10 = pnand %p3713_p9, %p3710_p6 }
  0x37   : > { %3718 = shalt.err (!%p3715_p10)
}
  0x38   : > { %s3719_s23 = scalar_lea.vmem %s3924_s26, 3072  ;;  %p3727_p4 = scmp.lt.s32.totalorder %s3924_s26, %s3924_s26 }
  0x39   : > { %p3720_p1 = scmp.ne.s32.totalorder %s3924_s26, %s3719_s23  ;;  %p3728_p7 = scmp.lt.s32.totalorder %s3719_s23, %s3719_s23 }
  0x3b   : > { %p3722_p2 = pnand %p3720_p1, %p3680_p0  ;;  %p3729_p8 = por %p3728_p7, %p3727_p4 }
  0x3d   : > { %p3723_p3 = pneg %p3722_p2 }
  0x3f   : > { %p3730_p11 = pnand %p3729_p8, %p3723_p3 }
  0x41   : > { %3733 = shalt.err (!%p3730_p11)
}
  0x42   : > { %3558 = dma.hbm_to_vmem [thread:$0]  (!%p3920_p12), %s4960_s5, 3072, %s3924_s26, [#allocation6], %s3808_s27, %s3808_s27, %s3809_s28  }
  0x43   : > { %p4981_p13 = scmp.ne.s32.totalorder %s4979_s21, 0 }
  0x44   : > { %p4982_p5 = scmp.eq.s32.totalorder (!%p4981_p13), %s3884_s13, 0 }
  0x45   : > { %317 = sbr.rel (%p4981_p13) target bundleno = 1199 (0x4af), region = 56 }
  0x4c   : > { %3779 = dma.done.wait (%p4982_p5), [#allocation3], 3072   ;;  %p4983_p0 = pmov %p4982_p5 }
  0x4e   : > { %3781 = vsyncadd (%p4983_p0), [#allocation3], 4294964224  ;;  %p4984_p6 = pmov %p4983_p0 }
  0x4f   : > { %p4985_p9 = pmov %p4983_p0 }
  0x50   : > { %3783 = dma.done.wait (%p4984_p6), [#allocation6], 3072  }
  0x51   : > { %3785 = vsyncadd (%p4985_p9), [#allocation6], 4294964224  ;;  %s2929_s18 = sshll.u32 %s3884_s13, 4  ;;  %v396_v0 = vlaneseq  ;;  %vm883_vm0 = vcmask 1043456   ;;  %vm858_vm3 = vcmask 64512   ;;  %v4971_v20 = vmov 0.0  }
  0x52   : > { %p358_p10 = scmp.lt.s32.totalorder %s2929_s18, 31  ;;  %v815_v9 = vld [vmem:[%s4956_s1] sm:$0xf]  ;;  %v2972_v18 = vld [vmem:[%s4956_s1 + $0x8] sm:$0xf]  ;;  %s354_s26 = sand.u32 1, %s3796_s10  }
  0x53   : > { %v3984_v1 = vshrl.u32 %v396_v0, 7  ;;  %3540 = vmatprep.subr.msk.bf16.mxu0 %vm883_vm0, %v815_v9  ;;  %v1009_v14 = vsel %vm883_vm0, %v815_v9, 0  ;;  %v4059_v33 = vld [vmem:[%s4956_s1 + $0x4] sm:$0xf]  ;;  %v1135_v36 = vsel %vm883_vm0, %v2972_v18, 0  ;;  %s3042_s14 = sshll.u32 %s3884_s13, 7 }
  0x54   : > { %s5014_s18 = smov (!%p358_p10, %s2929_s18), 31  ;;  %3196 = vmatpush3.bf16.msra.mxu0 %v1009_v14  ;;  %3539 = vmatprep.subr.msk.bf16.mxu1 %vm883_vm0, %v4059_v33  ;;  %s4913_s23 = scalar_lea.hbm %s4964_s9, %s3042_s14 }
  0x55   : > { %v417_v2 = vand.u32 15, %v3984_v1  ;;  %v399_v3 = vadd.s32 16, %v3984_v1  ;;  %s2930_s21 = sshll.u32 %s5014_s18, 2  ;;  %vm717_vm1 = vcmp.lt.s32.totalorder %v3984_v1, 1  ;;  %v401_v4 = vadd.s32 32, %v3984_v1  ;;  %3541 = vmatprep.subr.msk.bf16.mxu0 %vm883_vm0, %v2972_v18  ;;  %s2826_s11 = scalar_lea.sflag [#allocation4], %s354_s26 }
  0x56   : > { %s3993_s27 = scalar_lea.vmem %s4955_s0, %s2930_s21  ;;  %v403_v7 = vadd.s32 48, %v3984_v1  ;;  %v4001_v8 = vadd.s32 64, %v3984_v1  ;;  %v4013_v12 = vadd.s32 80, %v3984_v1  ;;  %v4016_v13 = vadd.s32 96, %v3984_v1  ;;  %p5006_p1 = scmp.ne.s32.totalorder %s4977_s19, 0 }
  0x57   : > { %vm3995_vm2 = vcmp.ne.s32.totalorder %v417_v2, 0  ;;  %v431_v6 = vand.u32 15, %v399_v3  ;;  %v4007_v10 = vld [vmem:[%s3993_s27] sm:$0xff]   ;;  %v4010_v11 = vld [vmem:[%s3993_s27 + $0x38] sm:$0xff]   ;;  %v4027_v19 = vld [vmem:[%s3993_s27 + $0x8] sm:$0xff]   ;;  %v445_v28 = vand.u32 15, %v401_v4 }
  0x58   : > { %v380_v15 = vunpack.c.l.bf16 %v4007_v10  ;;  %v381_v16 = vunpack.c.h.bf16 %v4007_v10  ;;  %v395_v17 = vunpack.c.h.bf16 %v4010_v11  ;;  %v4032_v21 = vsel %vm3995_vm2, 1.0, %v4971_v20  ;;  %v4037_v24 = vld [vmem:[%s3993_s27 + $0x10] sm:$0xff]   ;;  %v4069_v38 = vld [vmem:[%s3993_s27 + $0x18] sm:$0xff]   ;;  %v4085_v46 = vld [vmem:[%s3993_s27 + $0x20] sm:$0xff]   ;;  %3179 = vmatprep.mubr.msk.bf16.mxu1 %vm858_vm3, %v4007_v10  ;;  %s3812_s15 = smov [#allocation7]  }
  0x59   : > { %v382_v22 = vunpack.c.l.bf16 %v4027_v19  ;;  %v383_v23 = vunpack.c.h.bf16 %v4027_v19  ;;  %vm607_vm4 = vcmp.ne.s32.totalorder %v431_v6, 0  ;;  %v4054_v32 = vadd.s32 112, %v3984_v1  ;;  %v4104_v59 = vld [vmem:[%s3993_s27 + $0x28] sm:$0xff]   ;;  %v4112_v63 = vld [vmem:[%s3993_s27 + $0x30] sm:$0xff]   ;;  %s2928_s27 = sshll.u32 %s354_s26, 3  ;;  %s3738_s18 = sshll.u32 %s3812_s15, 4  ;;  %s3739_s18 = int_to_ptr.vmem [resolvable:$false] %s3738_s18 }
  0x5a   : > { %v701_v25 = vrot.slane %v380_v15, 7  ;;  %v702_v26 = vrot.slane %v381_v16, 7  ;;  %v4043_v27 = vrot.slane %v395_v17, 7  ;;  %v4047_v29 = vsel %vm607_vm4, 1.0, %v4971_v20  ;;  %s356_s16 = scalar_lea.vmem [#allocation7], %s2928_s27  ;;  %s3740_s21 = scalar_lea.vmem %s3739_s18, 256 }
  0x5b   : > { %v703_v30 = vrot.slane %v382_v22, 7  ;;  %v704_v31 = vrot.slane %v383_v23, 7  ;;  %v384_v37 = vunpack.c.l.bf16 %v4037_v24  ;;  %v385_v42 = vunpack.c.h.bf16 %v4037_v24  ;;  %s2839_s17 = sshll.u32 %s356_s16, 4  ;;  %s4915_s17 = int_to_ptr.vmem [resolvable:$true] %s2839_s17 }
  0x5c   : > { %v732_v34 = vsel %vm717_vm1, %v701_v25, %v702_v26  ;;  %v733_v35 = vsel %vm717_vm1, %v4043_v27, %v701_v25  ;;  %v4079_v43 = vrot.slane %v380_v15, 1  ;;  %vm609_vm5 = vcmp.ne.s32.totalorder %v445_v28, 0  ;;  %s3734_s13 = scalar_lea.vmem %s4915_s17, 128  ;;  %p3741_p4 = scmp.lt.s32.totalorder %s4915_s17, %s3739_s18 }
  0x5d   : > { %v734_v39 = vmul.f32 %v4032_v21, %v733_v35  ;;  %v730_v40 = vsel %vm717_vm1, %v703_v30, %v704_v31  ;;  %v731_v41 = vsel %vm717_vm1, %v702_v26, %v703_v30  ;;  %v705_v45 = vrot.slane %v384_v37, 7  ;;  %p3735_p12 = scmp.ne.s32.totalorder %s4915_s17, %s3734_s13  ;;  %p3742_p7 = scmp.lt.s32.totalorder %s3740_s21, %s3734_s13 }
  0x5e   : > { %v736_v44 = vmul.f32 %v4047_v29, %v731_v41  ;;  %v4088_v48 = vsel %vm609_vm5, 1.0, %v4971_v20  ;;  %v706_v49 = vrot.slane %v385_v42, 7  ;;  %v386_v50 = vunpack.c.l.bf16 %v4069_v38 }
  0x5f   : > { %v750_v47 = vpack.c.bf16 %v732_v34, %v734_v39  ;;  %v729_v52 = vsel %vm717_vm1, %v704_v31, %v705_v45  ;;  %v387_v53 = vunpack.c.h.bf16 %v4069_v38  ;;  %v459_v54 = vand.u32 15, %v403_v7  ;;  %p3736_p2 = pnand %p3735_p12, %p5006_p1  ;;  %p3743_p8 = por %p3742_p7, %p3741_p4 }
  0x60   : > { %v751_v51 = vpack.c.bf16 %v730_v40, %v736_v44  ;;  %v728_v55 = vsel %vm717_vm1, %v705_v45, %v706_v49  ;;  %v738_v56 = vmul.f32 %v4088_v48, %v729_v52  ;;  %v707_v57 = vrot.slane %v386_v50, 7 }
  0x61   : > { %3197 = vmatprep.mubr.msk.bf16.mxu0 %vm858_vm3, %v750_v47  ;;  %v388_v58 = vunpack.c.l.bf16 %v4085_v46  ;;  %vm611_vm6 = vcmp.ne.s32.totalorder %v459_v54, 0  ;;  %v708_v60 = vrot.slane %v387_v53, 7  ;;  %v389_v61 = vunpack.c.h.bf16 %v4085_v46  ;;  %p3737_p3 = pneg %p3736_p2 }
  0x62   : > { %3198 = vmatmul.mubr.msk.bf16.vlgmr.msra.gmra.mrb[0].mxu0 %vm858_vm3, %v751_v51  ;;  %v473_v62 = vand.u32 15, %v4001_v8  ;;  %v752_v0 = vpack.c.bf16 %v728_v55, %v738_v56  ;;  %v4115_v2 = vsel %vm611_vm6, 1.0, %v4971_v20  ;;  %v727_v3 = vsel %vm717_vm1, %v706_v49, %v707_v57 }
  0x63   : > { %3214 = vmatpush3.bf16.msra.mxu0 %v1135_v36  ;;  %v709_v4 = vrot.slane %v388_v58, 7  ;;  %v726_v5 = vsel %vm717_vm1, %v707_v57, %v708_v60  ;;  %v740_v6 = vmul.f32 %v4115_v2, %v727_v3  ;;  %v710_v7 = vrot.slane %v389_v61, 7  ;;  %v3614_v36 = vld [vmem:[#allocation2 + $0x40] sm:$0xff]   ;;  %p3744_p11 = pnand %p3743_p8, %p3737_p3 }
  0x64   : > { %vm613_vm7 = vcmp.ne.s32.totalorder %v473_v62, 0  ;;  %3201 = vmatprep.mubr.msk.bf16.mxu0 %vm858_vm3, %v752_v0  ;;  %v390_v14 = vunpack.c.l.bf16 %v4104_v59  ;;  %v391_v15 = vunpack.c.h.bf16 %v4104_v59  ;;  %vm774_vm8 = vcmp.lt.s32.totalorder %v3984_v1, 7  ;;  %v3615_v0 = vld [vmem:[#allocation2 + $0x48] sm:$0xff]  }
  0x65   : > { %v4128_v8 = vsel %vm613_vm7, 1.0, %v4971_v20  ;;  %v725_v9 = vsel %vm717_vm1, %v708_v60, %v709_v4  ;;  %v753_v18 = vpack.c.bf16 %v726_v5, %v740_v6  ;;  %v724_v25 = vsel %vm717_vm1, %v709_v4, %v710_v7 }
  0x66   : > { %v742_v26 = vmul.f32 %v4128_v8, %v725_v9  ;;  %v487_v28 = vand.u32 15, %v4013_v12  ;;  %v711_v30 = vrot.slane %v390_v14, 7  ;;  %v712_v31 = vrot.slane %v391_v15, 7 }
  0x67   : > { %v392_v34 = vunpack.c.l.bf16 %v4112_v63  ;;  %v393_v35 = vunpack.c.h.bf16 %v4112_v63  ;;  %v501_v40 = vand.u32 15, %v4016_v13  ;;  %v394_v41 = vunpack.c.l.bf16 %v4010_v11 }
  0x68   : > { %v754_v39 = vpack.c.bf16 %v724_v25, %v742_v26  ;;  %vm615_vm9 = vcmp.ne.s32.totalorder %v487_v28, 0  ;;  %v722_v12 = vsel %vm717_vm1, %v711_v30, %v712_v31  ;;  %v723_v45 = vsel %vm717_vm1, %v710_v7, %v711_v30 }
  0x69   : > { %v4148_v44 = vsel %vm615_vm9, 1.0, %v4971_v20  ;;  %v713_v47 = vrot.slane %v392_v34, 7  ;;  %vm617_vm10 = vcmp.ne.s32.totalorder %v501_v40, 0  ;;  %v714_v13 = vrot.slane %v393_v35, 7 }
  0x6a   : > { %3202 = vmatmul.mubr.msk.bf16.gmra.mrb[4].mxu0 %vm858_vm3, %v753_v18  ;;  %v744_v49 = vmul.f32 %v4148_v44, %v723_v45  ;;  %v515_v51 = vand.u32 15, %v4054_v32  ;;  %v4163_v52 = vsel %vm617_vm10, 1.0, %v4971_v20  ;;  %v715_v55 = vrot.slane %v394_v41, 7 }
  0x6b   : > { %3205 = vmatprep.mubr.msk.bf16.mxu0 %vm858_vm3, %v754_v39  ;;  %v721_v54 = vsel %vm717_vm1, %v712_v31, %v713_v47  ;;  %v885_v56 = vsel %vm883_vm0, %v4059_v33, 0  ;;  %v759_v57 = vrot.slane %v381_v16, 1  ;;  %v720_v32 = vsel %vm717_vm1, %v713_v47, %v714_v13 }
  0x6c   : > { %v746_v60 = vmul.f32 %v4163_v52, %v721_v54  ;;  %vm619_vm11 = vcmp.ne.s32.totalorder %v515_v51, 0  ;;  %3178 = vmatpush3.bf16.msra.mxu1 %v885_v56  ;;  %v761_v62 = vrot.slane %v383_v23, 1  ;;  %v755_v3 = vpack.c.bf16 %v722_v12, %v744_v49  ;;  %v3617_v49 = vld [vmem:[#allocation2 + $0x58] sm:$0xff]   ;;  %v3618_v56 = vld [vmem:[#allocation2 + $0x60] sm:$0xff]  }
  0x6d   : > { %3231 = vmatprep.subr.bf16.mxu1 %v3614_v36  ;;  %v4179_v4 = vsel %vm619_vm11, 1.0, %v4971_v20  ;;  %v398_v33 = vadd.s32 8, %v3984_v1  ;;  %v719_v16 = vsel %vm717_vm1, %v714_v13, %v715_v55  ;;  %v760_v6 = vrot.slane %v382_v22, 1 }
  0x6e   : > { %v756_v5 = vpack.c.bf16 %v720_v32, %v746_v60  ;;  %v400_v23 = vadd.s32 24, %v3984_v1  ;;  %v762_v7 = vrot.slane %v384_v37, 1  ;;  %v402_v26 = vadd.s32 40, %v3984_v1  ;;  %v3616_v37 = vld [vmem:[#allocation2 + $0x50] sm:$0xff]  }
  0x6f   : > { %3180 = vmatmul.mubr.msk.bf16.vlgmr.msra.gmra.mrb[0].mxu1 %vm858_vm3, %v4027_v19  ;;  %v424_v9 = vand.u32 15, %v398_v33  ;;  %v788_v18 = vsel %vm774_vm8, %v759_v57, %v760_v6  ;;  %v718_v10 = vsel %vm717_vm1, %v715_v55, %v4043_v27  ;;  %v748_v22 = vmul.f32 %v4179_v4, %v719_v16 }
  0x70   : > { %v438_v25 = vand.u32 15, %v400_v23  ;;  %3232 = vmatpush3.bf16.msra.mxu1 %v3614_v36  ;;  %3183 = vmatprep.mubr.msk.bf16.mxu1 %vm858_vm3, %v4037_v24  ;;  %v404_v19 = vadd.s32 56, %v3984_v1  ;;  %v789_v30 = vsel %vm774_vm8, %v4079_v43, %v759_v57  ;;  %v452_v27 = vand.u32 15, %v402_v26 }
  0x71   : > { %vm654_vm12 = vcmp.ne.s32.totalorder %v424_v9, 15  ;;  %3233 = vmatprep.subr.bf16.mxu1 %v3615_v0  ;;  %v763_v36 = vrot.slane %v385_v42, 1  ;;  %v764_v39 = vrot.slane %v386_v50, 1  ;;  %v786_v12 = vsel %vm774_vm8, %v761_v62, %v762_v7 }
  0x72   : > { %3206 = vmatmul.mubr.msk.bf16.gmra.mrb[8].mxu0 %vm858_vm3, %v755_v3  ;;  %v4206_v28 = vsel %vm654_vm12, 1.0, %v4971_v20  ;;  %vm656_vm13 = vcmp.ne.s32.totalorder %v438_v25, 15  ;;  %vm658_vm14 = vcmp.ne.s32.totalorder %v452_v27, 15  ;;  %v757_v45 = vpack.c.bf16 %v718_v10, %v748_v22 }
  0x73   : > { %3209 = vmatprep.mubr.msk.bf16.mxu0 %vm858_vm3, %v756_v5  ;;  %v792_v31 = vmul.f32 %v4206_v28, %v788_v18  ;;  %v4217_v40 = vsel %vm656_vm13, 1.0, %v4971_v20  ;;  %v466_v47 = vand.u32 15, %v404_v19  ;;  %v4225_v24 = vsel %vm658_vm14, 1.0, %v4971_v20 }
  0x74   : > { %3234 = vmatpush3.bf16.msra.mxu1 %v3615_v0  ;;  %v794_v51 = vmul.f32 %v4217_v40, %v786_v12  ;;  %v784_v42 = vsel %vm774_vm8, %v763_v36, %v764_v39  ;;  %v406_v50 = vadd.s32 72, %v3984_v1  ;;  %v787_v54 = vsel %vm774_vm8, %v760_v6, %v761_v62 }
  0x75   : > { %3235 = vmatprep.subr.bf16.mxu1 %v3616_v37  ;;  %v807_v13 = vpack.c.bf16 %v792_v31, %v789_v30  ;;  %v408_v55 = vadd.s32 88, %v3984_v1  ;;  %vm660_vm15 = vcmp.ne.s32.totalorder %v466_v47, 15  ;;  %v765_v57 = vrot.slane %v387_v53, 1 }
  0x76   : > { %v766_v32 = vrot.slane %v388_v58, 1  ;;  %v480_v60 = vand.u32 15, %v406_v50  ;;  %v785_v62 = vsel %vm774_vm8, %v762_v7, %v763_v36  ;;  %v796_v0 = vmul.f32 %v4225_v24, %v784_v42  ;;  %v3620_v42 = vld [vmem:[#allocation2 + $0x70] sm:$0xff]   ;;  %v3621_v50 = vld [vmem:[#allocation2 + $0x78] sm:$0xff]  }
  0x77   : > { %3184 = vmatmul.mubr.msk.bf16.gmra.mrb[4].mxu1 %vm858_vm3, %v4069_v38  ;;  %v767_v3 = vrot.slane %v389_v61, 1  ;;  %v494_v33 = vand.u32 15, %v408_v55  ;;  %v808_v5 = vpack.c.bf16 %v794_v51, %v787_v54  ;;  %v768_v38 = vrot.slane %v390_v14, 1  ;;  %v3619_v51 = vld [vmem:[#allocation2 + $0x68] sm:$0xff]   ;;  %v3638_v54 = vld [vmem:[#allocation5 + $0x40] sm:$0xff]  }
  0x78   : > { %3187 = vmatprep.mubr.msk.bf16.mxu1 %vm858_vm3, %v4085_v46  ;;  %3236 = vmatpush3.bf16.msra.mxu1 %v3616_v37  ;;  %vm662_vm0 = vcmp.ne.s32.totalorder %v480_v60, 15  ;;  %v4249_v53 = vsel %vm660_vm15, 1.0, %v4971_v20  ;;  %v410_v58 = vadd.s32 104, %v3984_v1  ;;  %v769_v46 = vrot.slane %v391_v15, 1  ;;  %v3639_v55 = vld [vmem:[#allocation5 + $0x48] sm:$0xff]  }
  0x79   : > { %3237 = vmatprep.subr.bf16.mxu1 %v3617_v49  ;;  %vm664_vm2 = vcmp.ne.s32.totalorder %v494_v33, 15  ;;  %v4253_v16 = vsel %vm662_vm0, 1.0, %v4971_v20  ;;  %v770_v61 = vrot.slane %v392_v34, 1  ;;  %v412_v6 = vadd.s32 120, %v3984_v1  ;;  %3327 = vmatprep.subr.bf16.mxu0 %v3638_v54  ;;  %v3657_v1 = vld [vmem:[#allocation5 + $0x98] sm:$0xff]  }
  0x7a   : > { %3210 = vmatmul.mubr.msk.bf16.gmra.mrb[12].mxu0 %vm858_vm3, %v757_v45  ;;  %v809_v14 = vpack.c.bf16 %v796_v0, %v785_v62  ;;  %v782_v23 = vsel %vm774_vm8, %v765_v57, %v766_v32  ;;  %v508_v7 = vand.u32 15, %v410_v58  ;;  %v771_v9 = vrot.slane %v393_v35, 1 }
  0x7b   : > { %3215 = vmatprep.mubr.msk.bf16.mxu0 %vm858_vm3, %v807_v13  ;;  %v780_v15 = vsel %vm774_vm8, %v767_v3, %v768_v38  ;;  %v4269_v18 = vsel %vm664_vm2, 1.0, %v4971_v20  ;;  %v522_v34 = vand.u32 15, %v412_v6  ;;  %v772_v25 = vrot.slane %v394_v41, 1 }
  0x7c   : > { %3238 = vmatpush3.bf16.msra.mxu1 %v3617_v49  ;;  %vm666_vm4 = vcmp.ne.s32.totalorder %v508_v7, 15  ;;  %v798_v35 = vmul.f32 %v4249_v53, %v782_v23  ;;  %v783_v26 = vsel %vm774_vm8, %v764_v39, %v765_v57  ;;  %v781_v22 = vsel %vm774_vm8, %v766_v32, %v767_v3  ;;  %v3641_v32 = vld [vmem:[#allocation5 + $0x58] sm:$0xff]   ;;  %v3642_v3 = vld [vmem:[#allocation5 + $0x60] sm:$0xff]   ;;  %v4324_v23 = vld [vmem:[%s4957_s2] ss:$0 sm:$0xff] }
  0x7d   : > { %3239 = vmatprep.subr.bf16.mxu1 %v3618_v56  ;;  %vm668_vm5 = vcmp.ne.s32.totalorder %v522_v34, 15  ;;  %v4284_v10 = vsel %vm666_vm4, 1.0, %v4971_v20  ;;  %v776_v30 = vsel %vm774_vm8, %v771_v9, %v772_v25  ;;  %v779_v31 = vsel %vm774_vm8, %v768_v38, %v769_v46 }
  0x7e   : > { %v4287_v41 = vsel %vm668_vm5, 1.0, %v4971_v20  ;;  %v810_v19 = vpack.c.bf16 %v798_v35, %v783_v26  ;;  %v804_v36 = vmul.f32 %v4284_v10, %v776_v30  ;;  %v777_v39 = vsel %vm774_vm8, %v770_v61, %v771_v9  ;;  %v3625_v20 = vld [vmem:[#allocation2 + $0x18] sm:$0xff]  }
  0x7f   : > { %3188 = vmatmul.mubr.msk.bf16.gmra.mrb[8].mxu1 %vm858_vm3, %v4104_v59  ;;  %v773_v59 = vrot.slane %v395_v17, 1  ;;  %v778_v17 = vsel %vm774_vm8, %v769_v46, %v770_v61  ;;  %vm2722_vm6 = vcmask 1042434   ;;  %vm2724_vm7 = vcmask 1043459  }
  0x80   : > { %3191 = vmatprep.mubr.msk.bf16.mxu1 %vm858_vm3, %v4112_v63  ;;  %3240 = vmatpush3.bf16.msra.mxu1 %v3618_v56  ;;  %v800_v63 = vmul.f32 %v4253_v16, %v780_v15  ;;  %v802_v27 = vmul.f32 %v4269_v18, %v778_v17  ;;  %v813_v45 = vpack.c.bf16 %v804_v36, %v777_v39  ;;  %v3640_v56 = vld [vmem:[#allocation5 + $0x50] sm:$0xff]   ;;  %vm2728_vm9 = vcmask 1045509  }
  0x81   : > { %v775_v49 = vsel %vm774_vm8, %v772_v25, %v773_v59  ;;  %3241 = vmatprep.subr.bf16.mxu1 %v3619_v51  ;;  %vm2730_vm10 = vcmask 1046534   ;;  %vm2732_vm11 = vcmask 1047559  }
  0x82   : > { %3216 = vmatmul.mubr.msk.bf16.vlgmr.msra.gmra.mrb[0].mxu0 %vm858_vm3, %v808_v5  ;;  %v811_v37 = vpack.c.bf16 %v800_v63, %v781_v22  ;;  %v812_v12 = vpack.c.bf16 %v802_v27, %v779_v31  ;;  %v3643_v5 = vld [vmem:[#allocation5 + $0x68] sm:$0xff]  }
  0x83   : > { %3219 = vmatprep.mubr.msk.bf16.mxu0 %vm858_vm3, %v809_v14  ;;  %3328 = vmatpush3.bf16.msra.mxu0 %v3638_v54 }
  0x84   : > { %3242 = vmatpush3.bf16.msra.mxu1 %v3619_v51  ;;  %3329 = vmatprep.subr.bf16.mxu0 %v3639_v55 }
  0x85   : > { %3243 = vmatprep.subr.bf16.mxu1 %v3620_v42 }
  0x87   : > { %3192 = vmatmul.mubr.msk.bf16.gmra.mrb[12].mxu1 %vm858_vm3, %v4010_v11  ;;  %v790_v11 = vsel %vm774_vm8, %v773_v59, %v4079_v43  ;;  %v4314_v43 = vld [vmem:[#allocation2] sm:$0xff]   ;;  %3330 = vmatpush3.bf16.msra.mxu0 %v3639_v55 }
  0x88   : > { %v806_v47 = vmul.f32 %v4287_v41, %v790_v11  ;;  %3244 = vmatpush3.bf16.msra.mxu1 %v3620_v42  ;;  %3331 = vmatprep.subr.bf16.mxu0 %v3640_v56 }
  0x89   : > { %3245 = vmatprep.subr.bf16.mxu1 %v3621_v50 }
  0x8a   : > { %3220 = vmatmul.mubr.msk.bf16.gmra.mrb[4].mxu0 %vm858_vm3, %v810_v19  ;;  %v814_v13 = vpack.c.bf16 %v806_v47, %v775_v49 }
  0x8b   : > { %3223 = vmatprep.mubr.msk.bf16.mxu0 %vm858_vm3, %v811_v37  ;;  %3332 = vmatpush3.bf16.msra.mxu0 %v3640_v56 }
  0x8c   : > { %3246 = vmatpush3.bf16.msra.mxu1 %v3621_v50  ;;  %3333 = vmatprep.subr.bf16.mxu0 %v3641_v32 }
  0x8d   : > { %3263 = vmatprep.subr.bf16.mxu1 %v4314_v43 }
  0x8f   : > { %3334 = vmatpush3.bf16.msra.mxu0 %v3641_v32 }
  0x90   : > { %3335 = vmatprep.subr.bf16.mxu0 %v3642_v3 }
  0x92   : > { %3224 = vmatmul.mubr.msk.bf16.gmra.mrb[8].mxu0 %vm858_vm3, %v812_v12 }
  0x93   : > { %3227 = vmatprep.mubr.msk.bf16.mxu0 %vm858_vm3, %v813_v45  ;;  %3336 = vmatpush3.bf16.msra.mxu0 %v3642_v3 }
  0x94   : > { %3337 = vmatprep.subr.bf16.mxu0 %v3643_v5 }
  0x97   : > { %3338 = vmatpush3.bf16.msra.mxu0 %v3643_v5 }
  0x9a   : > { %3228 = vmatmul.mubr.msk.bf16.gmra.mrb[12].mxu0 %vm858_vm3, %v814_v13  ;;  %vm2720_vm3 = vcmask 1041409  }
 0x142   : > { %v3181_v57 = vpop.f32.mrb[0].mxu1 }
 0x143   : > { %v921_v60 = vpop.f32.mrb[1].mxu1 }
 0x144   : > { %v3182_v62 = vpop.f32.mrb[2].mxu1 }
 0x145   : > { %v924_v0 = vpop.f32.mrb[3].mxu1 }
 0x14a   : > { %v3185_v33 = vpop.f32.mrb[4].mxu1 }
 0x14b   : > { %v937_v38 = vpop.f32.mrb[5].mxu1 }
 0x14c   : > { %v3186_v58 = vpop.f32.mrb[6].mxu1 }
 0x14d   : > { %v940_v46 = vpop.f32.mrb[7].mxu1 }
 0x152   : > { %v4317_v61 = vpop.f32.mrb[8].mxu1 }
 0x153   : > { %v4319_v6 = vpop.f32.mrb[9].mxu1 }
 0x154   : > { %v4326_v7 = vpop.f32.mrb[10].mxu1 }
 0x155   : > { %v3217_v14 = vpop.f32.mrb[0].mxu0  ;;  %v4328_v34 = vpop.f32.mrb[11].mxu1 }
 0x156   : > { %v3443_v9 = vadd.f32 %v3217_v14, %v3181_v57  ;;  %v1171_v15 = vpop.f32.mrb[1].mxu0 }
 0x157   : > { %v3444_v25 = vadd.f32 %v1171_v15, %v921_v60  ;;  %v3218_v35 = vpop.f32.mrb[2].mxu0 }
 0x158   : > { %v1259_v59 = vadd.f32 %v3443_v9, %v4324_v23  ;;  %v3445_v26 = vadd.f32 %v3218_v35, %v3182_v62  ;;  %v1174_v63 = vpop.f32.mrb[3].mxu0 }
 0x159   : > { %v1257_v22 = vadd.f32 %v3444_v25, %v4324_v23  ;;  %v3446_v19 = vadd.f32 %v1174_v63, %v924_v0  ;;  %v3623_v25 = vld [vmem:[#allocation2 + $0x8] sm:$0xff]  }
 0x15a   : > { %v1275_v37 = vmax.f32 %v1259_v59, 0.0  ;;  %v1260_v17 = vadd.f32 %v3445_v26, %v4324_v23  ;;  %v4336_v31 = vpop.f32.mrb[12].mxu1 }
 0x15b   : > { %v4333_v30 = vmax.f32 %v1257_v22, 0.0  ;;  %v1258_v27 = vadd.f32 %v3446_v19, %v4324_v23  ;;  %v4340_v12 = vpop.f32.mrb[13].mxu1 }
 0x15c   : > { %v1291_v36 = vrot.slane %v1275_v37, 7  ;;  %v4338_v39 = vmax.f32 %v1260_v17, 0.0  ;;  %v1347_v45 = vrot.slane %v1275_v37, 1  ;;  %v4344_v51 = vpop.f32.mrb[14].mxu1 }
 0x15d   : > { %v1289_v11 = vrot.slane %v4333_v30, 7  ;;  %v4973_v47 = vrot.slane %v4333_v30, 1  ;;  %v1274_v49 = vmax.f32 %v1258_v27, 0.0  ;;  %v3221_v13 = vpop.f32.mrb[4].mxu0  ;;  %v4349_v57 = vpop.f32.mrb[15].mxu1 }
 0x15e   : > { %v1292_v42 = vrot.slane %v4338_v39, 7  ;;  %v1348_v50 = vrot.slane %v4338_v39, 1  ;;  %v1402_v54 = vpack.c.bf16 %v4338_v39, %v1275_v37  ;;  %v3447_v55 = vadd.f32 %v3221_v13, %v3185_v33  ;;  %v1187_v56 = vpop.f32.mrb[5].mxu0 }
 0x15f   : > { %v1290_v32 = vrot.slane %v1274_v49, 7  ;;  %v1346_v60 = vrot.slane %v1274_v49, 1  ;;  %v3448_v62 = vadd.f32 %v1187_v56, %v937_v38  ;;  %v3222_v0 = vpop.f32.mrb[6].mxu0  ;;  %v1401_v3 = vpack.c.bf16 %v1274_v49, %v4333_v30  ;;  %v3624_v49 = vld [vmem:[#allocation2 + $0x10] sm:$0xff]  }
 0x160   : > { %v4356_v5 = vsel %vm717_vm1, %v1291_v36, %v1292_v42  ;;  %v4360_v14 = vsel %vm774_vm8, %v1347_v45, %v1348_v50  ;;  %v1263_v33 = vadd.f32 %v3447_v55, %v4324_v23  ;;  %v3449_v9 = vadd.f32 %v3222_v0, %v3186_v58  ;;  %v1190_v15 = vpop.f32.mrb[7].mxu0 }
 0x161   : > { %v1318_v38 = vsel %vm717_vm1, %v1290_v32, %v1291_v36  ;;  %v1261_v35 = vadd.f32 %v3448_v62, %v4324_v23  ;;  %v3450_v59 = vadd.f32 %v1190_v15, %v940_v46  ;;  %3247 = vmatprep.mubr.bf16.mxu1 %v1401_v3  ;;  %v4370_v26 = vsel %vm717_vm1, %v1289_v11, %v1290_v32 }
 0x162   : > { %v4373_v63 = vmul.f32 %v4047_v29, %v1318_v38  ;;  %v4375_v22 = vmax.f32 %v1263_v33, 0.0  ;;  %v1264_v58 = vadd.f32 %v3449_v9, %v4324_v23  ;;  %3248 = vmatmul.mubr.bf16.vlgmr.msra.gmra.mrb[16].mxu1 %v1402_v54  ;;  %v1374_v19 = vsel %vm774_vm8, %v1346_v60, %v1347_v45 }
 0x163   : > { %v4380_v37 = vmax.f32 %v1261_v35, 0.0  ;;  %v1262_v46 = vadd.f32 %v3450_v59, %v4324_v23  ;;  %3264 = vmatpush3.bf16.msra.mxu1 %v4314_v43  ;;  %v4388_v17 = vsel %vm774_vm8, %v4973_v47, %v1346_v60  ;;  %v4391_v27 = vmul.f32 %v4206_v28, %v1374_v19 }
 0x164   : > { %v4393_v36 = vmax.f32 %v1264_v58, 0.0  ;;  %3265 = vmatprep.subr.bf16.mxu1 %v3623_v25  ;;  %v1295_v32 = vrot.slane %v4375_v22, 7  ;;  %v1351_v33 = vrot.slane %v4375_v22, 1 }
 0x165   : > { %v1293_v13 = vrot.slane %v4380_v37, 7  ;;  %v1349_v43 = vrot.slane %v4380_v37, 1  ;;  %v4399_v54 = vmax.f32 %v1262_v46, 0.0  ;;  %v3225_v55 = vpop.f32.mrb[8].mxu0 }
 0x166   : > { %v1296_v60 = vrot.slane %v4393_v36, 7  ;;  %v3451_v62 = vadd.f32 %v3225_v55, %v4317_v61  ;;  %v1203_v0 = vpop.f32.mrb[9].mxu0  ;;  %v1404_v3 = vpack.c.bf16 %v4393_v36, %v4375_v22 }
 0x167   : > { %v1372_v9 = vsel %vm774_vm8, %v1348_v50, %v1349_v43  ;;  %v1294_v15 = vrot.slane %v4399_v54, 7  ;;  %v3452_v38 = vadd.f32 %v1203_v0, %v4319_v6  ;;  %3266 = vmatpush3.bf16.msra.mxu1 %v3623_v25  ;;  %v3226_v35 = vpop.f32.mrb[10].mxu0  ;;  %v1403_v46 = vpack.c.bf16 %v4399_v54, %v4380_v37 }
 0x168   : > { %v4416_v59 = vmul.f32 %v4217_v40, %v1372_v9  ;;  %v1267_v61 = vadd.f32 %v3451_v62, %v4324_v23  ;;  %v3453_v58 = vadd.f32 %v3226_v35, %v4326_v7  ;;  %v1206_v19 = vpop.f32.mrb[11].mxu0  ;;  %3267 = vmatprep.subr.bf16.mxu1 %v3624_v49  ;;  %v1316_v25 = vsel %vm717_vm1, %v1292_v42, %v1293_v13  ;;  %v3627_v42 = vld [vmem:[#allocation2 + $0x28] sm:$0xff]  }
 0x169   : > { %v1265_v50 = vadd.f32 %v3452_v38, %v4324_v23  ;;  %v3454_v55 = vadd.f32 %v1206_v19, %v4328_v34  ;;  %v4426_v6 = vsel %vm717_vm1, %v1293_v13, %v1294_v15  ;;  %3251 = vmatprep.mubr.bf16.mxu1 %v1403_v46  ;;  %v4436_v0 = vmul.f32 %v4088_v48, %v1316_v25 }
 0x16a   : > { %v4432_v7 = vmax.f32 %v1267_v61, 0.0  ;;  %v1268_v62 = vadd.f32 %v3453_v58, %v4324_v23  ;;  %v4440_v34 = vsel %vm717_vm1, %v1295_v32, %v1296_v60  ;;  %3252 = vmatmul.mubr.bf16.gmra.mrb[20].mxu1 %v1404_v3  ;;  %v1314_v39 = vsel %vm717_vm1, %v1294_v15, %v1295_v32  ;;  %v3626_v15 = vld [vmem:[#allocation2 + $0x20] sm:$0xff]  }
 0x16b   : > { %v4442_v9 = vmax.f32 %v1265_v50, 0.0  ;;  %v1266_v38 = vadd.f32 %v3454_v55, %v4324_v23  ;;  %v1350_v35 = vrot.slane %v4399_v54, 1  ;;  %3268 = vmatpush3.bf16.msra.mxu1 %v3624_v49  ;;  %v4460_v50 = vmul.f32 %v4115_v2, %v1314_v39 }
 0x16c   : > { %v4451_v61 = vmax.f32 %v1268_v62, 0.0  ;;  %v1299_v19 = vrot.slane %v4432_v7, 7  ;;  %3269 = vmatprep.subr.bf16.mxu1 %v3625_v20 }
 0x16d   : > { %v1297_v3 = vrot.slane %v4442_v9, 7  ;;  %v4457_v46 = vmax.f32 %v1266_v38, 0.0  ;;  %v3229_v32 = vpop.f32.mrb[12].mxu0 }
 0x16e   : > { %v1300_v55 = vrot.slane %v4451_v61, 7  ;;  %v3455_v49 = vadd.f32 %v3229_v32, %v4336_v31  ;;  %v1219_v25 = vpop.f32.mrb[13].mxu0  ;;  %v1406_v62 = vpack.c.bf16 %v4451_v61, %v4432_v7  ;;  %v1356_v13 = vrot.slane %v4451_v61, 1 }
 0x16f   : > { %v1298_v38 = vrot.slane %v4457_v46, 7  ;;  %v3456_v56 = vadd.f32 %v1219_v25, %v4340_v12  ;;  %v3230_v58 = vpop.f32.mrb[14].mxu0  ;;  %v1405_v39 = vpack.c.bf16 %v4457_v46, %v4442_v9  ;;  %3270 = vmatpush3.bf16.msra.mxu1 %v3625_v20  ;;  %v1312_v54 = vsel %vm717_vm1, %v1296_v60, %v1297_v3 }
 0x170   : > { %v1271_v45 = vadd.f32 %v3455_v49, %v4324_v23  ;;  %v3457_v47 = vadd.f32 %v3230_v58, %v4344_v51  ;;  %v1222_v31 = vpop.f32.mrb[15].mxu0  ;;  %3271 = vmatprep.subr.bf16.mxu1 %v3626_v15  ;;  %v4489_v49 = vmul.f32 %v4128_v8, %v1312_v54  ;;  %v4493_v60 = vsel %vm717_vm1, %v1299_v19, %v1300_v55 }
 0x171   : > { %v1269_v12 = vadd.f32 %v3456_v56, %v4324_v23  ;;  %v3458_v25 = vadd.f32 %v1222_v31, %v4349_v57  ;;  %3255 = vmatprep.mubr.bf16.mxu1 %v1405_v39  ;;  %v4483_v20 = vsel %vm717_vm1, %v1297_v3, %v1298_v38  ;;  %v1310_v61 = vsel %vm717_vm1, %v1298_v38, %v1299_v19  ;;  %v3628_v19 = vld [vmem:[#allocation2 + $0x30] sm:$0xff]  }
 0x172   : > { %v4485_v51 = vmax.f32 %v1271_v45, 0.0  ;;  %v1272_v58 = vadd.f32 %v3457_v47, %v4324_v23  ;;  %3256 = vmatmul.mubr.bf16.gmra.mrb[24].mxu1 %v1406_v62  ;;  %v1370_v45 = vsel %vm774_vm8, %v1350_v35, %v1351_v33  ;;  %v1354_v47 = vrot.slane %v4457_v46, 1 }
 0x173   : > { %v1285_v56 = vmax.f32 %v1269_v12, 0.0  ;;  %v1270_v57 = vadd.f32 %v3458_v25, %v4324_v23  ;;  %3272 = vmatpush3.bf16.msra.mxu1 %v3626_v15  ;;  %v4508_v38 = vmul.f32 %v4148_v44, %v1310_v61  ;;  %v4515_v15 = vsel %vm774_vm8, %v1349_v43, %v1350_v35 }
 0x174   : > { %v1303_v3 = vrot.slane %v4485_v51, 7  ;;  %v1288_v54 = vmax.f32 %v1272_v58, 0.0  ;;  %v1359_v23 = vrot.slane %v4485_v51, 1  ;;  %3273 = vmatprep.subr.bf16.mxu1 %v3627_v42  ;;  %v4530_v43 = vmul.f32 %v4225_v24, %v1370_v45 }
 0x175   : > { %v1301_v62 = vrot.slane %v1285_v56, 7  ;;  %v1286_v31 = vmax.f32 %v1270_v57, 0.0  ;;  %v1357_v12 = vrot.slane %v1285_v56, 1  ;;  %v1342_v57 = vpack.c.bf16 %v4493_v60, %v4508_v38  ;;  %v3629_v60 = vld [vmem:[#allocation2 + $0x38] sm:$0xff]  }
 0x176   : > { %v1304_v25 = vrot.slane %v1288_v54, 7  ;;  %v1408_v46 = vpack.c.bf16 %v1288_v54, %v4485_v51  ;;  %v1360_v58 = vrot.slane %v1288_v54, 1  ;;  %v1395_v54 = vpack.c.bf16 %v4530_v43, %v4515_v15 }
 0x177   : > { %v1302_v39 = vrot.slane %v1286_v31, 7  ;;  %v1407_v32 = vpack.c.bf16 %v1286_v31, %v1285_v56  ;;  %3274 = vmatpush3.bf16.msra.mxu1 %v3627_v42  ;;  %v1308_v51 = vsel %vm717_vm1, %v1300_v55, %v1301_v62  ;;  %v1358_v35 = vrot.slane %v1286_v31, 1 }
 0x178   : > { %v1320_v61 = vsel %vm717_vm1, %v1304_v25, %v1289_v11  ;;  %v4527_v37 = vsel %vm717_vm1, %v1303_v3, %v1304_v25  ;;  %3275 = vmatprep.subr.bf16.mxu1 %v3628_v19  ;;  %v1333_v11 = vmul.f32 %v4163_v52, %v1308_v51  ;;  %v4988_v45 = vrot.slane %v4442_v9, 1 }
 0x179   : > { %3259 = vmatprep.mubr.bf16.mxu1 %v1407_v32  ;;  %v1321_v42 = vmul.f32 %v4032_v21, %v1320_v61  ;;  %v1307_v56 = vsel %vm717_vm1, %v1301_v62, %v1302_v39  ;;  %v1306_v55 = vsel %vm717_vm1, %v1302_v39, %v1303_v3  ;;  %v4989_v31 = vrot.slane %v4393_v36, 1 }
 0x17a   : > { %3260 = vmatmul.mubr.bf16.gmra.mrb[28].mxu1 %v1408_v46  ;;  %v1343_v39 = vpack.c.bf16 %v1307_v56, %v1333_v11  ;;  %v1335_v25 = vmul.f32 %v4179_v4, %v1306_v55  ;;  %v4991_v51 = vrot.slane %v4432_v7, 1  ;;  %v4992_v22 = vmov %v4988_v45 }
 0x17b   : > { %v1368_v32 = vsel %vm774_vm8, %v4989_v31, %v4988_v45  ;;  %v4990_v38 = vmov %v4989_v31  ;;  %v1337_v3 = vpack.c.bf16 %v4370_v26, %v1321_v42  ;;  %3276 = vmatpush3.bf16.msra.mxu1 %v3628_v19  ;;  %v1364_v46 = vsel %vm774_vm8, %v1356_v13, %v1357_v12  ;;  %v3630_v19 = vld [vmem:[#allocation2 + $0x80] sm:$0xff]  }
 0x17c   : > { %v4552_v62 = vsel %vm774_vm8, %v1351_v33, %v4990_v38  ;;  %v1384_v61 = vmul.f32 %v4249_v53, %v1368_v32  ;;  %v1366_v36 = vsel %vm774_vm8, %v1354_v47, %v4991_v51  ;;  %v1367_v33 = vsel %vm774_vm8, %v4992_v22, %v1354_v47  ;;  %3277 = vmatprep.subr.bf16.mxu1 %v3629_v60 }
 0x17d   : > { %v4993_v26 = vmov %v4991_v51  ;;  %3279 = vmatprep.mubr.bf16.mxu1 %v1337_v3  ;;  %v1344_v56 = vpack.c.bf16 %v4527_v37, %v1335_v25  ;;  %v1386_v9 = vmul.f32 %v4253_v16, %v1366_v36  ;;  %v1388_v55 = vmul.f32 %v4269_v18, %v1364_v46  ;;  %v3631_v3 = vld [vmem:[#allocation2 + $0x88] sm:$0xff]  }
 0x17e   : > { %v1365_v42 = vsel %vm774_vm8, %v4993_v26, %v1356_v13  ;;  %v1396_v11 = vpack.c.bf16 %v1384_v61, %v4552_v62  ;;  %v1362_v47 = vsel %vm774_vm8, %v1358_v35, %v1359_v23  ;;  %v1363_v7 = vsel %vm774_vm8, %v1357_v12, %v1358_v35 }
 0x17f   : > { %v1361_v13 = vsel %vm774_vm8, %v1359_v23, %v1360_v58  ;;  %v1397_v45 = vpack.c.bf16 %v1386_v9, %v1367_v33  ;;  %v1390_v31 = vmul.f32 %v4284_v10, %v1362_v47  ;;  %v4994_v37 = vrot.slane %v4333_v30, 1  ;;  %3278 = vmatpush3.bf16.msra.mxu1 %v3629_v60  ;;  %v3632_v30 = vld [vmem:[#allocation2 + $0x90] sm:$0xff]  }
 0x180   : > { %v1398_v38 = vpack.c.bf16 %v1388_v55, %v1365_v42  ;;  %3295 = vmatprep.subr.bf16.mxu1 %v3630_v19  ;;  %v4995_v12 = vpack.c.bf16 %v4356_v5, %v4373_v63  ;;  %v4996_v23 = vpack.c.bf16 %v4426_v6, %v4436_v0  ;;  %v4997_v35 = vpack.c.bf16 %v4440_v34, %v4460_v50  ;;  %v3634_v5 = vld [vmem:[#allocation2 + $0xa0] sm:$0xff]   ;;  %v3635_v63 = vld [vmem:[#allocation2 + $0xa8] sm:$0xff]   ;;  %v3636_v6 = vld [vmem:[#allocation2 + $0xb0] sm:$0xff]  }
 0x181   : > { %v1376_v32 = vsel %vm774_vm8, %v1360_v58, %v4994_v37  ;;  %v1399_v25 = vpack.c.bf16 %v1390_v31, %v1363_v7  ;;  %v3633_v58 = vld [vmem:[#allocation2 + $0x98] sm:$0xff]   ;;  %v4998_v60 = vpack.c.bf16 %v4483_v20, %v4489_v49  ;;  %v4999_v34 = vpack.c.bf16 %v4391_v27, %v4388_v17  ;;  %v3644_v49 = vld [vmem:[#allocation5 + $0x70] sm:$0xff]   ;;  %v3646_v27 = vld [vmem:[#allocation5] sm:$0xff]  }
 0x182   : > { %v1392_v62 = vmul.f32 %v4287_v41, %v1376_v32  ;;  %3280 = vmatmul.mubr.bf16.vlgmr.msra.gmra.mrb[16].mxu1 %v4995_v12  ;;  %v3637_v0 = vld [vmem:[#allocation2 + $0xb8] sm:$0xff]   ;;  %v5000_v50 = vmov 0.0   ;;  %v5001_v20 = vpack.c.bf16 %v4416_v59, %v4360_v14  ;;  %3339 = vmatprep.subr.bf16.mxu0 %v3644_v49  ;;  %v4612_v14 = vld [vmem:[%s4959_s4] ss:$0 sm:$0xff] }
 0x183   : > { %3296 = vmatpush3.bf16.msra.mxu1 %v3630_v19  ;;  %3283 = vmatprep.mubr.bf16.mxu1 %v4996_v23  ;;  %v3645_v17 = vld [vmem:[#allocation5 + $0x78] sm:$0xff]  }
 0x184   : > { %v1400_v61 = vpack.c.bf16 %v1392_v62, %v1361_v13  ;;  %3297 = vmatprep.subr.bf16.mxu1 %v3631_v3  ;;  %3340 = vmatpush3.bf16.msra.mxu0 %v3644_v49  ;;  %v3648_v49 = vld [vmem:[#allocation5 + $0x10] sm:$0xff]  }
 0x185   : > { %3341 = vmatprep.subr.bf16.mxu0 %v3645_v17 }
 0x187   : > { %3298 = vmatpush3.bf16.msra.mxu1 %v3631_v3  ;;  %v3647_v3 = vld [vmem:[#allocation5 + $0x8] sm:$0xff]  }
 0x188   : > { %3299 = vmatprep.subr.bf16.mxu1 %v3632_v30  ;;  %3342 = vmatpush3.bf16.msra.mxu0 %v3645_v17 }
 0x189   : > { %3359 = vmatprep.subr.bf16.mxu0 %v3646_v27 }
 0x18a   : > { %3284 = vmatmul.mubr.bf16.gmra.mrb[20].mxu1 %v4997_v35 }
 0x18b   : > { %3300 = vmatpush3.bf16.msra.mxu1 %v3632_v30  ;;  %3287 = vmatprep.mubr.bf16.mxu1 %v4998_v60 }
 0x18c   : > { %3301 = vmatprep.subr.bf16.mxu1 %v3633_v58 }
 0x18f   : > { %3302 = vmatpush3.bf16.msra.mxu1 %v3633_v58 }
 0x190   : > { %3303 = vmatprep.subr.bf16.mxu1 %v3634_v5 }
 0x192   : > { %3288 = vmatmul.mubr.bf16.gmra.mrb[24].mxu1 %v1342_v57 }
 0x193   : > { %3304 = vmatpush3.bf16.msra.mxu1 %v3634_v5  ;;  %3291 = vmatprep.mubr.bf16.mxu1 %v1343_v39 }
 0x194   : > { %3305 = vmatprep.subr.bf16.mxu1 %v3635_v63 }
 0x197   : > { %3306 = vmatpush3.bf16.msra.mxu1 %v3635_v63 }
 0x198   : > { %3307 = vmatprep.subr.bf16.mxu1 %v3636_v6 }
 0x19a   : > { %3292 = vmatmul.mubr.bf16.gmra.mrb[28].mxu1 %v1344_v56 }
 0x19b   : > { %3308 = vmatpush3.bf16.msra.mxu1 %v3636_v6  ;;  %3311 = vmatprep.mubr.bf16.mxu1 %v4999_v34 }
 0x19c   : > { %3309 = vmatprep.subr.bf16.mxu1 %v3637_v0 }
 0x19f   : > { %3310 = vmatpush3.bf16.msra.mxu1 %v3637_v0 }
 0x1a0   : > { %3423 = vmatprep.subr.bf16.mxu1 %v5000_v50 }
 0x1a2   : > { %3312 = vmatmul.mubr.bf16.vlgmr.msra.gmra.mrb[16].mxu1 %v5001_v20 }
 0x1a3   : > { %3315 = vmatprep.mubr.bf16.mxu1 %v1395_v54 }
 0x1aa   : > { %3316 = vmatmul.mubr.bf16.gmra.mrb[20].mxu1 %v1396_v11 }
 0x1ab   : > { %3319 = vmatprep.mubr.bf16.mxu1 %v1397_v45 }
 0x1b2   : > { %3320 = vmatmul.mubr.bf16.gmra.mrb[24].mxu1 %v1398_v38 }
 0x1b3   : > { %3323 = vmatprep.mubr.bf16.mxu1 %v1399_v25 }
 0x1ba   : > { %3324 = vmatmul.mubr.bf16.gmra.mrb[28].mxu1 %v1400_v61 }
 0x275   : > { %v3313_v59 = vpop.f32.mrb[16].mxu1 }
 0x276   : > { %v1919_v15 = vadd.f32 %v3313_v59, %v4612_v14  ;;  %v1831_v57 = vpop.f32.mrb[17].mxu1 }
 0x277   : > { %v1917_v43 = vadd.f32 %v4612_v14, %v1831_v57  ;;  %v3314_v54 = vpop.f32.mrb[18].mxu1 }
 0x278   : > { %v1935_v39 = vmax.f32 %v1919_v15, 0.0  ;;  %v1920_v51 = vadd.f32 %v3314_v54, %v4612_v14  ;;  %v1834_v36 = vpop.f32.mrb[19].mxu1 }
 0x279   : > { %v4617_v22 = vmax.f32 %v1917_v43, 0.0  ;;  %v1918_v33 = vadd.f32 %v4612_v14, %v1834_v36 }
 0x27a   : > { %v1936_v46 = vmax.f32 %v1920_v51, 0.0  ;;  %v1951_v26 = vrot.slane %v1935_v39, 7  ;;  %v2007_v19 = vrot.slane %v1935_v39, 1 }
 0x27b   : > { %v1934_v42 = vmax.f32 %v1918_v33, 0.0  ;;  %v1949_v55 = vrot.slane %v4617_v22, 7  ;;  %v2005_v31 = vrot.slane %v4617_v22, 1 }
 0x27c   : > { %v1952_v56 = vrot.slane %v1936_v46, 7  ;;  %v2008_v11 = vrot.slane %v1936_v46, 1  ;;  %v2062_v9 = vpack.c.bf16 %v1936_v46, %v1935_v39 }
 0x27d   : > { %v1950_v47 = vrot.slane %v1934_v42, 7  ;;  %v2006_v7 = vrot.slane %v1934_v42, 1  ;;  %v3317_v13 = vpop.f32.mrb[20].mxu1  ;;  %v2061_v45 = vpack.c.bf16 %v1934_v42, %v4617_v22  ;;  %v3659_v22 = vld [vmem:[#allocation5 + $0xa8] sm:$0xff]  }
 0x27e   : > { %v4625_v37 = vsel %vm717_vm1, %v1951_v26, %v1952_v56  ;;  %v4629_v32 = vsel %vm774_vm8, %v2007_v19, %v2008_v11  ;;  %v1923_v38 = vadd.f32 %v3317_v13, %v4612_v14  ;;  %v1847_v62 = vpop.f32.mrb[21].mxu1 }
 0x27f   : > { %v1978_v25 = vsel %vm717_vm1, %v1950_v47, %v1951_v26  ;;  %v1921_v61 = vadd.f32 %v4612_v14, %v1847_v62  ;;  %v3318_v12 = vpop.f32.mrb[22].mxu1  ;;  %3343 = vmatprep.mubr.bf16.mxu0 %v2061_v45  ;;  %v4639_v23 = vsel %vm717_vm1, %v1949_v55, %v1950_v47  ;;  %v2034_v30 = vsel %vm774_vm8, %v2006_v7, %v2007_v19  ;;  %v3649_v47 = vld [vmem:[#allocation5 + $0x18] sm:$0xff]  }
 0x280   : > { %v4644_v58 = vmul.f32 %v4047_v29, %v1978_v25  ;;  %v4646_v35 = vmax.f32 %v1923_v38, 0.0  ;;  %v1924_v60 = vadd.f32 %v3318_v12, %v4612_v14  ;;  %v1850_v5 = vpop.f32.mrb[23].mxu1  ;;  %3344 = vmatmul.mubr.bf16.vlgmr.msra.gmra.mrb[16].mxu0 %v2062_v9  ;;  %v4653_v63 = vsel %vm774_vm8, %v2005_v31, %v2006_v7 }
 0x281   : > { %v1937_v6 = vmax.f32 %v1921_v61, 0.0  ;;  %v1922_v0 = vadd.f32 %v4612_v14, %v1850_v5  ;;  %3360 = vmatpush3.bf16.msra.mxu0 %v3646_v27  ;;  %v4657_v34 = vmul.f32 %v4206_v28, %v2034_v30 }
 0x282   : > { %v1955_v29 = vrot.slane %v4646_v35, 7  ;;  %v4660_v20 = vmax.f32 %v1924_v60, 0.0  ;;  %3361 = vmatprep.subr.bf16.mxu0 %v3647_v3  ;;  %v1998_v17 = vpack.c.bf16 %v4625_v37, %v4644_v58  ;;  %v2011_v27 = vrot.slane %v4646_v35, 1  ;;  %v3661_v37 = vld [vmem:[#allocation5 + $0xb8] sm:$0xff]  }
 0x283   : > { %v1953_v59 = vrot.slane %v1937_v6, 7  ;;  %v2009_v15 = vrot.slane %v1937_v6, 1  ;;  %v1938_v57 = vmax.f32 %v1922_v0, 0.0  ;;  %v5002_v58 = vpack.c.bf16 %v4657_v34, %v4653_v63  ;;  %v3662_v63 = vld [vmem:[%s4962_s7] sm:$0xff]   ;;  %v3664_v34 = vld [vmem:[%s4962_s7 + $0x10] sm:$0xff]  }
 0x284   : > { %v1956_v28 = vrot.slane %v4660_v20, 7  ;;  %v2012_v54 = vrot.slane %v4660_v20, 1  ;;  %v2064_v39 = vpack.c.bf16 %v4660_v20, %v4646_v35  ;;  %3424 = vmatpush3.bf16.msra.mxu1 %v3662_v63 }
 0x285   : > { %v2032_v51 = vsel %vm774_vm8, %v2008_v11, %v2009_v15  ;;  %v1954_v36 = vrot.slane %v1938_v57, 7  ;;  %v2010_v33 = vrot.slane %v1938_v57, 1  ;;  %3362 = vmatpush3.bf16.msra.mxu0 %v3647_v3  ;;  %v3321_v46 = vpop.f32.mrb[24].mxu1  ;;  %v2063_v26 = vpack.c.bf16 %v1938_v57, %v1937_v6  ;;  %3425 = vmatprep.subr.bf16.mxu1 %v5000_v50 }
 0x286   : > { %v4674_v42 = vmul.f32 %v4217_v40, %v2032_v51  ;;  %v1927_v19 = vadd.f32 %v3321_v46, %v4612_v14  ;;  %v1863_v9 = vpop.f32.mrb[25].mxu1  ;;  %3363 = vmatprep.subr.bf16.mxu0 %v3648_v49  ;;  %v1976_v7 = vsel %vm717_vm1, %v1952_v56, %v1953_v59  ;;  %v4681_v13 = vsel %vm717_vm1, %v1955_v29, %v1956_v28 }
 0x287   : > { %v1925_v11 = vadd.f32 %v4612_v14, %v1863_v9  ;;  %v3322_v45 = vpop.f32.mrb[26].mxu1  ;;  %3347 = vmatprep.mubr.bf16.mxu0 %v2063_v26  ;;  %v4686_v40 = vsel %vm717_vm1, %v1953_v59, %v1954_v36  ;;  %v4689_v38 = vmul.f32 %v4088_v48, %v1976_v7  ;;  %v1974_v62 = vsel %vm717_vm1, %v1954_v36, %v1955_v29  ;;  %v3650_v29 = vld [vmem:[#allocation5 + $0x20] sm:$0xff]  }
 0x288   : > { %v4693_v3 = vmax.f32 %v1927_v19, 0.0  ;;  %v1928_v56 = vadd.f32 %v3322_v45, %v4612_v14  ;;  %v1866_v25 = vpop.f32.mrb[27].mxu1  ;;  %3348 = vmatmul.mubr.bf16.gmra.mrb[20].mxu0 %v2064_v39  ;;  %v4697_v61 = vmul.f32 %v4115_v2, %v1974_v62  ;;  %v2030_v5 = vsel %vm774_vm8, %v2010_v33, %v2011_v27 }
 0x289   : > { %v4701_v30 = vmax.f32 %v1925_v11, 0.0  ;;  %v1926_v48 = vadd.f32 %v4612_v14, %v1866_v25  ;;  %3364 = vmatpush3.bf16.msra.mxu0 %v3648_v49  ;;  %v1999_v60 = vpack.c.bf16 %v4686_v40, %v4689_v38  ;;  %v4720_v51 = vsel %vm774_vm8, %v2009_v15, %v2010_v33  ;;  %v3666_v38 = vld [vmem:[%s4962_s7 + $0x20] sm:$0xff]  }
 0x28a   : > { %v1959_v6 = vrot.slane %v4693_v3, 7  ;;  %v2015_v2 = vrot.slane %v4693_v3, 1  ;;  %v4712_v0 = vmax.f32 %v1928_v56, 0.0  ;;  %3365 = vmatprep.subr.bf16.mxu0 %v3649_v47  ;;  %v2000_v59 = vpack.c.bf16 %v4681_v13, %v4697_v61  ;;  %v3651_v56 = vld [vmem:[#allocation5 + $0x28] sm:$0xff]   ;;  %v3667_v61 = vld [vmem:[%s4962_s7 + $0x28] sm:$0xff]  }
 0x28b   : > { %v1957_v49 = vrot.slane %v4701_v30, 7  ;;  %v2013_v57 = vrot.slane %v4701_v30, 1  ;;  %v1942_v39 = vmax.f32 %v1926_v48, 0.0  ;;  %v4727_v19 = vmul.f32 %v4225_v24, %v2030_v5 }
 0x28c   : > { %v1960_v36 = vrot.slane %v4712_v0, 7  ;;  %v2016_v46 = vrot.slane %v4712_v0, 1  ;;  %v2066_v26 = vpack.c.bf16 %v4712_v0, %v4693_v3 }
 0x28d   : > { %v1958_v9 = vrot.slane %v1942_v39, 7  ;;  %v2014_v7 = vrot.slane %v1942_v39, 1  ;;  %3366 = vmatpush3.bf16.msra.mxu0 %v3649_v47  ;;  %v3325_v11 = vpop.f32.mrb[28].mxu1  ;;  %v2065_v45 = vpack.c.bf16 %v1942_v39, %v4701_v30  ;;  %v1972_v15 = vsel %vm717_vm1, %v1956_v28, %v1957_v49 }
 0x28e   : > { %v1931_v33 = vadd.f32 %v3325_v11, %v4612_v14  ;;  %v1879_v62 = vpop.f32.mrb[29].mxu1  ;;  %3367 = vmatprep.subr.bf16.mxu0 %v3650_v29  ;;  %v4734_v25 = vmul.f32 %v4128_v8, %v1972_v15  ;;  %v4738_v24 = vsel %vm717_vm1, %v1959_v6, %v1960_v36  ;;  %v2028_v8 = vsel %vm774_vm8, %v2012_v54, %v2013_v57 }
 0x28f   : > { %v1929_v30 = vadd.f32 %v4612_v14, %v1879_v62  ;;  %v3326_v48 = vpop.f32.mrb[30].mxu1  ;;  %3351 = vmatprep.mubr.bf16.mxu0 %v2065_v45  ;;  %v4745_v28 = vsel %vm717_vm1, %v1957_v49, %v1958_v9  ;;  %v1970_v5 = vsel %vm717_vm1, %v1958_v9, %v1959_v6  ;;  %v4766_v6 = vsel %vm774_vm8, %v2011_v27, %v2012_v54 }
 0x290   : > { %v1947_v39 = vmax.f32 %v1931_v33, 0.0  ;;  %v1932_v11 = vadd.f32 %v3326_v48, %v4612_v14  ;;  %v1882_v15 = vpop.f32.mrb[31].mxu1  ;;  %3352 = vmatmul.mubr.bf16.gmra.mrb[24].mxu0 %v2066_v26  ;;  %v2001_v45 = vpack.c.bf16 %v4745_v28, %v4734_v25  ;;  %v4757_v62 = vmul.f32 %v4148_v44, %v1970_v5  ;;  %v3652_v44 = vld [vmem:[#allocation5 + $0x30] sm:$0xff]  }
 0x291   : > { %v1945_v49 = vmax.f32 %v1929_v30, 0.0  ;;  %v1930_v47 = vadd.f32 %v4612_v14, %v1882_v15  ;;  %3368 = vmatpush3.bf16.msra.mxu0 %v3650_v29  ;;  %v4769_v26 = vmul.f32 %v4249_v53, %v2028_v8  ;;  %v2026_v53 = vsel %vm774_vm8, %v2014_v7, %v2015_v2 }
 0x292   : > { %v1963_v9 = vrot.slane %v1947_v39, 7  ;;  %v2019_v33 = vrot.slane %v1947_v39, 1  ;;  %v1948_v48 = vmax.f32 %v1932_v11, 0.0  ;;  %3369 = vmatprep.subr.bf16.mxu0 %v3651_v56  ;;  %v2002_v14 = vpack.c.bf16 %v4738_v24, %v4757_v62 }
 0x293   : > { %v1961_v29 = vrot.slane %v1945_v49, 7  ;;  %v2017_v30 = vrot.slane %v1945_v49, 1  ;;  %v1946_v20 = vmax.f32 %v1930_v47, 0.0  ;;  %v3653_v47 = vld [vmem:[#allocation5 + $0x38] sm:$0xff]   ;;  %v4790_v43 = vsel %vm774_vm8, %v2013_v57, %v2014_v7 }
 0x294   : > { %v1964_v5 = vrot.slane %v1948_v48, 7  ;;  %v2020_v27 = vrot.slane %v1948_v48, 1  ;;  %v2068_v54 = vpack.c.bf16 %v1948_v48, %v1947_v39  ;;  %v5004_v13 = vpack.c.bf16 %v4727_v19, %v4720_v51  ;;  %v4886_v51 = vld [vmem:[%s4961_s6] ss:$0 sm:$0xff] }
 0x295   : > { %v1962_v8 = vrot.slane %v1946_v20, 7  ;;  %v2018_v11 = vrot.slane %v1946_v20, 1  ;;  %3370 = vmatpush3.bf16.msra.mxu0 %v3651_v56  ;;  %v2067_v15 = vpack.c.bf16 %v1946_v20, %v1945_v49  ;;  %v1968_v12 = vsel %vm717_vm1, %v1960_v36, %v1961_v29 }
 0x296   : > { %3371 = vmatprep.subr.bf16.mxu0 %v3652_v44  ;;  %v1980_v35 = vsel %vm717_vm1, %v1964_v5, %v1949_v55  ;;  %v1993_v39 = vmul.f32 %v4163_v52, %v1968_v12  ;;  %v1965_v48 = vsel %vm717_vm1, %v1963_v9, %v1964_v5  ;;  %v2046_v55 = vmul.f32 %v4253_v16, %v2026_v53 }
 0x297   : > { %3355 = vmatprep.mubr.bf16.mxu0 %v2067_v15  ;;  %v1981_v56 = vmul.f32 %v4032_v21, %v1980_v35  ;;  %v1967_v36 = vsel %vm717_vm1, %v1961_v29, %v1962_v8  ;;  %v1966_v49 = vsel %vm717_vm1, %v1962_v8, %v1963_v9  ;;  %v2024_v57 = vsel %vm774_vm8, %v2016_v46, %v2017_v30  ;;  %v3654_v29 = vld [vmem:[#allocation5 + $0x80] sm:$0xff]  }
 0x298   : > { %3356 = vmatmul.mubr.bf16.gmra.mrb[28].mxu0 %v2068_v54  ;;  %v2003_v52 = vpack.c.bf16 %v1967_v36, %v1993_v39  ;;  %v1995_v12 = vmul.f32 %v4179_v4, %v1966_v49  ;;  %v2025_v21 = vsel %vm774_vm8, %v2015_v2, %v2016_v46  ;;  %v2057_v16 = vpack.c.bf16 %v2046_v55, %v4790_v43 }
 0x299   : > { %3372 = vmatpush3.bf16.msra.mxu0 %v3652_v44  ;;  %v1997_v7 = vpack.c.bf16 %v4639_v23, %v1981_v56  ;;  %v2048_v9 = vmul.f32 %v4269_v18, %v2024_v57  ;;  %v2022_v4 = vsel %vm774_vm8, %v2018_v11, %v2019_v33  ;;  %v2023_v0 = vsel %vm774_vm8, %v2017_v30, %v2018_v11  ;;  %v3655_v44 = vld [vmem:[#allocation5 + $0x88] sm:$0xff]  }
 0x29a   : > { %3373 = vmatprep.subr.bf16.mxu0 %v3653_v47  ;;  %v2004_v20 = vpack.c.bf16 %v1965_v48, %v1995_v12  ;;  %v2050_v3 = vmul.f32 %v4284_v10, %v2022_v4  ;;  %v2021_v2 = vsel %vm774_vm8, %v2019_v33, %v2020_v27  ;;  %v2036_v18 = vsel %vm774_vm8, %v2020_v27, %v2005_v31  ;;  %v3656_v10 = vld [vmem:[#allocation5 + $0x90] sm:$0xff]  }
 0x29b   : > { %3375 = vmatprep.mubr.bf16.mxu0 %v1997_v7  ;;  %v2058_v23 = vpack.c.bf16 %v2048_v9, %v2025_v21  ;;  %v2052_v46 = vmul.f32 %v4287_v41, %v2036_v18  ;;  %v3658_v41 = vld [vmem:[#allocation5 + $0xa0] sm:$0xff]   ;;  %v3660_v31 = vld [vmem:[#allocation5 + $0xb0] sm:$0xff]   ;;  %v5005_v40 = vpack.c.bf16 %v4769_v26, %v4766_v6  ;;  %vm3811_vm1 = vmmov 0  }
 0x29c   : > { %v2059_v43 = vpack.c.bf16 %v2050_v3, %v2023_v0  ;;  %3439 = vmatprep.mubr.msk.bf16.mxu1 %vm3811_vm1, %v5000_v50  ;;  %vm2726_vm8 = vcmask 1044484  }
 0x29d   : > { %3374 = vmatpush3.bf16.msra.mxu0 %v3653_v47  ;;  %v2060_v35 = vpack.c.bf16 %v2052_v46, %v2021_v2 }
 0x29e   : > { %3391 = vmatprep.subr.bf16.mxu0 %v3654_v29 }
 0x2a0   : > { %3376 = vmatmul.mubr.bf16.vlgmr.msra.gmra.mrb[16].mxu0 %v1998_v17  ;;  %v5003_v17 = vpack.c.bf16 %v4674_v42, %v4629_v32  ;;  %v3663_v32 = vld [vmem:[%s4962_s7 + $0x8] sm:$0xff]   ;;  %v3665_v42 = vld [vmem:[%s4962_s7 + $0x18] sm:$0xff]  }
 0x2a1   : > { %3392 = vmatpush3.bf16.msra.mxu0 %v3654_v29  ;;  %3379 = vmatprep.mubr.bf16.mxu0 %v1999_v60  ;;  %v3668_v60 = vld [vmem:[%s4962_s7 + $0x30] sm:$0xff]  }
 0x2a2   : > { %3393 = vmatprep.subr.bf16.mxu0 %v3655_v44  ;;  %3426 = vmatpush3.bf16.msra.mxu1 %v3663_v32 }
 0x2a3   : > { %3427 = vmatprep.subr.bf16.mxu1 %v5000_v50 }
 0x2a5   : > { %3394 = vmatpush3.bf16.msra.mxu0 %v3655_v44 }
 0x2a6   : > { %3395 = vmatprep.subr.bf16.mxu0 %v3656_v10  ;;  %3428 = vmatpush3.bf16.msra.mxu1 %v3664_v34 }
 0x2a7   : > { %3429 = vmatprep.subr.bf16.mxu1 %v5000_v50 }
 0x2a8   : > { %3380 = vmatmul.mubr.bf16.gmra.mrb[20].mxu0 %v2000_v59  ;;  %v3669_v59 = vld [vmem:[%s4962_s7 + $0x38] sm:$0xff]  }
 0x2a9   : > { %3396 = vmatpush3.bf16.msra.mxu0 %v3656_v10  ;;  %3383 = vmatprep.mubr.bf16.mxu0 %v2001_v45 }
 0x2aa   : > { %3397 = vmatprep.subr.bf16.mxu0 %v3657_v1  ;;  %3430 = vmatpush3.bf16.msra.mxu1 %v3665_v42 }
 0x2ab   : > { %3431 = vmatprep.subr.bf16.mxu1 %v5000_v50 }
 0x2ad   : > { %3398 = vmatpush3.bf16.msra.mxu0 %v3657_v1 }
 0x2ae   : > { %3399 = vmatprep.subr.bf16.mxu0 %v3658_v41  ;;  %3432 = vmatpush3.bf16.msra.mxu1 %v3666_v38 }
 0x2af   : > { %3433 = vmatprep.subr.bf16.mxu1 %v5000_v50 }
 0x2b0   : > { %3384 = vmatmul.mubr.bf16.gmra.mrb[24].mxu0 %v2002_v14 }
 0x2b1   : > { %3400 = vmatpush3.bf16.msra.mxu0 %v3658_v41  ;;  %3387 = vmatprep.mubr.bf16.mxu0 %v2003_v52 }
 0x2b2   : > { %3401 = vmatprep.subr.bf16.mxu0 %v3659_v22  ;;  %3434 = vmatpush3.bf16.msra.mxu1 %v3667_v61 }
 0x2b3   : > { %3435 = vmatprep.subr.bf16.mxu1 %v5000_v50 }
 0x2b5   : > { %3402 = vmatpush3.bf16.msra.mxu0 %v3659_v22 }
 0x2b6   : > { %3403 = vmatprep.subr.bf16.mxu0 %v3660_v31  ;;  %3436 = vmatpush3.bf16.msra.mxu1 %v3668_v60 }
 0x2b7   : > { %3437 = vmatprep.subr.bf16.mxu1 %v5000_v50 }
 0x2b8   : > { %3388 = vmatmul.mubr.bf16.gmra.mrb[28].mxu0 %v2004_v20 }
 0x2b9   : > { %3404 = vmatpush3.bf16.msra.mxu0 %v3660_v31  ;;  %3407 = vmatprep.mubr.bf16.mxu0 %v5002_v58 }
 0x2ba   : > { %3405 = vmatprep.subr.bf16.mxu0 %v3661_v37  ;;  %3438 = vmatpush3.bf16.msra.mxu1 %v3669_v59 }
 0x2bd   : > { %3406 = vmatpush3.bf16.msra.mxu0 %v3661_v37 }
 0x2c0   : > { %3408 = vmatmul.mubr.bf16.vlgmr.msra.gmra.mrb[16].mxu0 %v5003_v17 }
 0x2c1   : > { %3411 = vmatprep.mubr.bf16.mxu0 %v5004_v13 }
 0x2c8   : > { %3412 = vmatmul.mubr.bf16.gmra.mrb[20].mxu0 %v5005_v40 }
 0x2c9   : > { %3415 = vmatprep.mubr.bf16.mxu0 %v2057_v16 }
 0x2d0   : > { %3416 = vmatmul.mubr.bf16.gmra.mrb[24].mxu0 %v2058_v23 }
 0x2d1   : > { %3419 = vmatprep.mubr.bf16.mxu0 %v2059_v43 }
 0x2d8   : > { %3420 = vmatmul.mubr.bf16.gmra.mrb[28].mxu0 %v2060_v35 }
 0x393   : > { %v3409_v19 = vpop.f32.mrb[16].mxu0 }
 0x394   : > { %v2579_v25 = vadd.f32 %v3409_v19, %v4886_v51  ;;  %v2491_v24 = vpop.f32.mrb[17].mxu0 }
 0x395   : > { %v2577_v28 = vadd.f32 %v4886_v51, %v2491_v24  ;;  %v3410_v45 = vpop.f32.mrb[18].mxu0 }
 0x396   : > { %v2580_v62 = vadd.f32 %v3410_v45, %v4886_v51  ;;  %v2494_v6 = vpop.f32.mrb[19].mxu0  ;;  %v2595_v33 = vmax.f32 %v2579_v25, 0.0 }
 0x397   : > { %v2578_v26 = vadd.f32 %v4886_v51, %v2494_v6  ;;  %v2593_v14 = vmax.f32 %v2577_v28, 0.0 }
 0x398   : > { %v2596_v50 = vmax.f32 %v2580_v62, 0.0 }
 0x399   : > { %v2594_v30 = vmax.f32 %v2578_v26, 0.0 }
 0x39a   : > { %v2616_v5 = vadd.f32 %v2596_v50, %v2595_v33 }
 0x39b   : > { %v2609_v27 = vadd.f32 %v2594_v30, %v2593_v14  ;;  %v3413_v54 = vpop.f32.mrb[20].mxu0 }
 0x39c   : > { %v2617_v53 = vrot.slane %v2616_v5, 4  ;;  %v2583_v8 = vadd.f32 %v3413_v54, %v4886_v51  ;;  %v2507_v11 = vpop.f32.mrb[21].mxu0 }
 0x39d   : > { %v2610_v15 = vrot.slane %v2609_v27, 4  ;;  %v2581_v47 = vadd.f32 %v4886_v51, %v2507_v11  ;;  %v3414_v39 = vpop.f32.mrb[22].mxu0 }
 0x39e   : > { %v2618_v48 = vadd.f32 %v2617_v53, %v2616_v5  ;;  %v2584_v56 = vadd.f32 %v3414_v39, %v4886_v51  ;;  %v2510_v36 = vpop.f32.mrb[23].mxu0  ;;  %v2599_v12 = vmax.f32 %v2583_v8, 0.0 }
 0x39f   : > { %v2611_v49 = vadd.f32 %v2610_v15, %v2609_v27  ;;  %v2582_v55 = vadd.f32 %v4886_v51, %v2510_v36  ;;  %v2597_v7 = vmax.f32 %v2581_v47, 0.0 }
 0x3a0   : > { %v2619_v52 = vrot.slane %v2618_v48, 2  ;;  %v2600_v57 = vmax.f32 %v2584_v56, 0.0 }
 0x3a1   : > { %v2612_v21 = vrot.slane %v2611_v49, 2  ;;  %v2598_v16 = vmax.f32 %v2582_v55, 0.0 }
 0x3a2   : > { %v2620_v9 = vadd.f32 %v2619_v52, %v2618_v48  ;;  %v2630_v4 = vadd.f32 %v2600_v57, %v2599_v12 }
 0x3a3   : > { %v2613_v29 = vadd.f32 %v2612_v21, %v2611_v49  ;;  %v2623_v20 = vadd.f32 %v2598_v16, %v2597_v7  ;;  %v3417_v0 = vpop.f32.mrb[24].mxu0 }
 0x3a4   : > { %v2621_v3 = vrot.slane %v2620_v9, 1  ;;  %v2631_v2 = vrot.slane %v2630_v4, 4  ;;  %v2587_v23 = vadd.f32 %v3417_v0, %v4886_v51  ;;  %v2523_v18 = vpop.f32.mrb[25].mxu0 }
 0x3a5   : > { %v2614_v43 = vrot.slane %v2613_v29, 1  ;;  %v2624_v46 = vrot.slane %v2623_v20, 4  ;;  %v2585_v44 = vadd.f32 %v4886_v51, %v2523_v18  ;;  %v3418_v35 = vpop.f32.mrb[26].mxu0 }
 0x3a6   : > { %v2622_v10 = vadd.f32 %v2621_v3, %v2620_v9  ;;  %v2632_v1 = vadd.f32 %v2631_v2, %v2630_v4  ;;  %v2588_v41 = vadd.f32 %v3418_v35, %v4886_v51  ;;  %v2526_v22 = vpop.f32.mrb[27].mxu0  ;;  %v2603_v40 = vmax.f32 %v2587_v23, 0.0 }
 0x3a7   : > { %v2615_v31 = vadd.f32 %v2614_v43, %v2613_v29  ;;  %v2625_v37 = vadd.f32 %v2624_v46, %v2623_v20  ;;  %v2586_v58 = vadd.f32 %v4886_v51, %v2526_v22  ;;  %v2601_v42 = vmax.f32 %v2585_v44, 0.0 }
 0x3a8   : > { %v2666_v17 = vmul.f32 0.0625, %v2622_v10  ;;  %v2633_v13 = vrot.slane %v2632_v1, 2  ;;  %v2604_v63 = vmax.f32 %v2588_v41, 0.0 }
 0x3a9   : > { %v2665_v32 = vmul.f32 0.0625, %v2615_v31  ;;  %v2626_v34 = vrot.slane %v2625_v37, 2  ;;  %v2602_v38 = vmax.f32 %v2586_v58, 0.0 }
 0x3aa   : > { %v2674_v61 = vpack.c.bf16 %v2666_v17, %v2666_v17  ;;  %v2634_v60 = vadd.f32 %v2633_v13, %v2632_v1  ;;  %v2644_v59 = vadd.f32 %v2604_v63, %v2603_v40 }
 0x3ab   : > { %v2673_v19 = vpack.c.bf16 %v2665_v32, %v2665_v32  ;;  %v2627_v25 = vadd.f32 %v2626_v34, %v2625_v37  ;;  %v2637_v24 = vadd.f32 %v2602_v38, %v2601_v42  ;;  %v3421_v28 = vpop.f32.mrb[28].mxu0 }
 0x3ac   : > { %v2713_v45 = vunpack.c.l.b16 %v2674_v61  ;;  %v2635_v62 = vrot.slane %v2634_v60, 1  ;;  %v2645_v6 = vrot.slane %v2644_v59, 4  ;;  %v2591_v26 = vadd.f32 %v3421_v28, %v4886_v51  ;;  %v2539_v33 = vpop.f32.mrb[29].mxu0 }
 0x3ad   : > { %v2712_v50 = vunpack.c.l.b16 %v2673_v19  ;;  %v2628_v14 = vrot.slane %v2627_v25, 1  ;;  %v2638_v30 = vrot.slane %v2637_v24, 4  ;;  %v2589_v5 = vadd.f32 %v4886_v51, %v2539_v33  ;;  %v3422_v27 = vpop.f32.mrb[30].mxu0 }
 0x3ae   : > { %v2636_v54 = vadd.f32 %v2635_v62, %v2634_v60  ;;  %v2646_v53 = vadd.f32 %v2645_v6, %v2644_v59  ;;  %v2592_v8 = vadd.f32 %v3422_v27, %v4886_v51  ;;  %v2542_v11 = vpop.f32.mrb[31].mxu0  ;;  %v2607_v48 = vmax.f32 %v2591_v26, 0.0 }
 0x3af   : > { %v2721_v15 = vsel %vm2720_vm3, %v2713_v45, %v2712_v50  ;;  %v2629_v47 = vadd.f32 %v2628_v14, %v2627_v25  ;;  %v2639_v39 = vadd.f32 %v2638_v30, %v2637_v24  ;;  %v2590_v55 = vadd.f32 %v4886_v51, %v2542_v11  ;;  %v3032_v50 = vld [vmem:[%s4963_s8] ss:$0 sm:$0xff] }
 0x3b0   : > { %v2668_v56 = vmul.f32 0.0625, %v2636_v54  ;;  %v2647_v36 = vrot.slane %v2646_v53, 2  ;;  %v2608_v49 = vmax.f32 %v2592_v8, 0.0  ;;  %v2605_v57 = vmax.f32 %v2589_v5, 0.0 }
 0x3b1   : > { %v2667_v52 = vmul.f32 0.0625, %v2629_v47  ;;  %v2640_v12 = vrot.slane %v2639_v39, 2  ;;  %v2606_v9 = vmax.f32 %v2590_v55, 0.0 }
 0x3b2   : > { %v2676_v21 = vpack.c.bf16 %v2668_v56, %v2668_v56  ;;  %v2648_v7 = vadd.f32 %v2647_v36, %v2646_v53  ;;  %v2658_v16 = vadd.f32 %v2608_v49, %v2607_v48 }
 0x3b3   : > { %v2675_v4 = vpack.c.bf16 %v2667_v52, %v2667_v52  ;;  %v2641_v29 = vadd.f32 %v2640_v12, %v2639_v39  ;;  %v2651_v3 = vadd.f32 %v2606_v9, %v2605_v57 }
 0x3b4   : > { %v2649_v20 = vrot.slane %v2648_v7, 1  ;;  %v2659_v0 = vrot.slane %v2658_v16, 4  ;;  %v2715_v18 = vunpack.c.l.b16 %v2676_v21 }
 0x3b5   : > { %v2714_v2 = vunpack.c.l.b16 %v2675_v4  ;;  %v2642_v23 = vrot.slane %v2641_v29, 1  ;;  %v2652_v51 = vrot.slane %v2651_v3, 4 }
 0x3b6   : > { %v2650_v43 = vadd.f32 %v2649_v20, %v2648_v7  ;;  %v2660_v46 = vadd.f32 %v2659_v0, %v2658_v16 }
 0x3b7   : > { %v2723_v44 = vsel %vm2722_vm6, %v2714_v2, %v2721_v15  ;;  %v2643_v35 = vadd.f32 %v2642_v23, %v2641_v29  ;;  %v2653_v22 = vadd.f32 %v2652_v51, %v2651_v3 }
 0x3b8   : > { %v2670_v10 = vmul.f32 0.0625, %v2650_v43  ;;  %v2725_v1 = vsel %vm2724_vm7, %v2715_v18, %v2723_v44  ;;  %v2661_v41 = vrot.slane %v2660_v46, 2 }
 0x3b9   : > { %v2669_v31 = vmul.f32 0.0625, %v2643_v35  ;;  %v2654_v17 = vrot.slane %v2653_v22, 2 }
 0x3ba   : > { %v2678_v37 = vpack.c.bf16 %v2670_v10, %v2670_v10  ;;  %v2662_v58 = vadd.f32 %v2661_v41, %v2660_v46 }
 0x3bb   : > { %v2677_v13 = vpack.c.bf16 %v2669_v31, %v2669_v31  ;;  %v2655_v63 = vadd.f32 %v2654_v17, %v2653_v22 }
 0x3bc   : > { %v2663_v40 = vrot.slane %v2662_v58, 1  ;;  %v2717_v34 = vunpack.c.l.b16 %v2678_v37 }
 0x3bd   : > { %v2716_v32 = vunpack.c.l.b16 %v2677_v13  ;;  %v2656_v38 = vrot.slane %v2655_v63, 1 }
 0x3be   : > { %v2664_v42 = vadd.f32 %v2663_v40, %v2662_v58 }
 0x3bf   : > { %v2727_v61 = vsel %vm2726_vm8, %v2716_v32, %v2725_v1  ;;  %v2657_v59 = vadd.f32 %v2656_v38, %v2655_v63 }
 0x3c0   : > { %v2672_v60 = vmul.f32 0.0625, %v2664_v42  ;;  %v2729_v19 = vsel %vm2728_vm9, %v2717_v34, %v2727_v61 }
 0x3c1   : > { %v2671_v25 = vmul.f32 0.0625, %v2657_v59 }
 0x3c2   : > { %v2680_v24 = vpack.c.bf16 %v2672_v60, %v2672_v60 }
 0x3c3   : > { %v2679_v28 = vpack.c.bf16 %v2671_v25, %v2671_v25 }
 0x3c4   : > { %v2719_v62 = vunpack.c.l.b16 %v2680_v24 }
 0x3c5   : > { %v2718_v45 = vunpack.c.l.b16 %v2679_v28 }
 0x3c7   : > { %v2731_v6 = vsel %vm2730_vm10, %v2718_v45, %v2729_v19 }
 0x3c8   : > { %v2733_v26 = vsel %vm2732_vm11, %v2719_v62, %v2731_v6 }
 0x3c9   : > { %v2734_v33 = vpack.c.b16 %v2733_v26, %v2733_v26 }
 0x3cb   : > { %3440 = vmatmul.mubr.bf16.vlgmr.msra.gmra.mrb[32].mxu1 %v2734_v33 }
 0x49e   : > { %v2818_v14 = vpop.f32.mrb[32].mxu1 }
 0x49f   : > { %v2819_v30 = vadd.f32 %v3032_v50, %v2818_v14  ;;  %v3441_v5 = vpop.f32.mrb[33].mxu1 }
 0x4a0   : > { %v2821_v27 = vpop.f32.mrb[34].mxu1 }
 0x4a1   : > { %2824 = vst [vmem:[%s356_s16] sm:$0xff] %v2819_v30  ;;  %v3442_v54 = vpop.f32.mrb[35].mxu1 }
 0x4a2   : > { %3747 = shalt.err (!%p3744_p11)
}
 0x4a3   : > { %s3748_s24 = scalar_lea.hbm %s4913_s23, 128  ;;  %s3752_s28 = scalar_lea.hbm %s4964_s9, 256 }
 0x4a4   : > { %p3749_p13 = scmp.ne.s32.totalorder %s4913_s23, %s3748_s24  ;;  %p3753_p6 = scmp.lt.u32.totalorder %s4913_s23, %s4964_s9 }
 0x4a5   : > { %p3754_p9 = scmp.lt.u32.totalorder %s3752_s28, %s3748_s24  ;;  %p3756_p12 = scmp.lt.u32.totalorder %s3748_s24, %s4913_s23 }
 0x4a6   : > { %p3750_p5 = pnand %p3749_p13, %p5006_p1 }
 0x4a7   : > { %p3755_p10 = por %p3754_p9, %p3753_p6 }
 0x4a8   : > { %p3751_p0 = pneg %p3750_p5 }
 0x4a9   : > { %p3757_p2 = por %p3756_p12, %p3755_p10 }
 0x4ab   : > { %p3758_p3 = pnand %p3757_p2, %p3751_p0 }
 0x4ad   : > { %3761 = shalt.err (!%p3758_p3)
}
 0x4ae   : > { %3550 = dma.vmem_to_hbm [thread:$0]  (%p5006_p1), %s4915_s17, 128, %s4913_s23, %s2826_s11  }
 0x4af PF: > { %p3567_p4 = scmp.ge.s32.totalorder %s3804_s12, 2  ;;  %s2851_s16 = sand.u32 1, %s3792_s30  }
 0x4b0   : > { %p5007_p7 = scmp.ne.s32.totalorder %s4978_s20, 0  ;;  %s2852_s22 = scalar_lea.sflag [#allocation4], %s2851_s16 }
 0x4b2   : > { %p3560_p8 = pnand %p3567_p4, %p5007_p7 }
 0x4b4   : > { %3787 = dma.done.wait (!%p3560_p8), %s2852_s22, 128  }
 0x4b5   : > { %3789 = vsyncadd (!%p3560_p8), %s2852_s22, 4294967168  ;;  %s5008_s12 = sld [smem:[#allocation12_spill]]  ;;  %s5009_s25 = sld [smem:[#allocation11_spill]] }
 0x4b6   : > { %s5010_s11 = sld [smem:[#allocation13_spill]]  ;;  %s5011_s30 = smov %s3796_s10 }
 0x4bb   : > { %p21_p11 = scmp.ge.s32.totalorder %s5008_s12, 4   ;;  %s5012_s10 = smov %s5009_s25 }
 0x4bd   :  { %23 = sbr.rel (!%p21_p11) target bundleno = 5 (0x5), region = 106 }
 0x4c4   :  { %2857 = vsyncpa [#allocation3], 1 }
 0x4c5   :  { %2859 = vsyncpa [#allocation3 + $0x1], 1 }
 0x4c6   :  { %2860 = vsyncpa [#allocation6], 1 }
 0x4c7   :  { %2861 = vsyncpa [#allocation4], 1 }
 0x4c8   :  { %2863 = vsyncpa [#allocation4 + $0x1], 1 }

</bundles_post_ra>
